<compile_context>
chip_gen: v7x
topology: tpu7x:2x2x1
jax: 0.10.0
libtpu: 0.0.40
codegen_flags: <defaults>
</compile_context>

<pallas_src>
import math
from functools import lru_cache, partial

import numpy as np

import jax
import jax.numpy as jnp
from jax.experimental import pallas as pl
from jax.experimental.pallas import tpu as pltpu


ALPHA = 16   # sparseKernelFT1d modes inside MultiWaveletTransform (default alpha=16)


# ----------------------------------------------------------------------------
# Pallas kernels
# ----------------------------------------------------------------------------

def _mm_bias_kernel(x_ref, w_ref, b_ref, o_ref):
    o_ref[...] = (jnp.dot(x_ref[...], w_ref[...],
                          preferred_element_type=jnp.float32) + b_ref[...])


def pallas_linear(x, w, b, tm=256):
    """y = x @ w + b  (torch Linear semantics, w stored as (in, out)).

    Rows are tiled over a 'parallel' grid so large M double-buffers and can shard
    across the two TensorCores on v7x; weights/bias use a constant index_map.
    """
    shp = x.shape
    x2 = x.reshape(-1, shp[-1]).astype(jnp.float32)
    w = w.astype(jnp.float32)
    M, K = x2.shape
    N = w.shape[1]
    b2 = jnp.asarray(b, jnp.float32).reshape(1, N)
    tm_eff = M if M <= tm else tm
    out = pl.pallas_call(
        _mm_bias_kernel,
        out_shape=jax.ShapeDtypeStruct((M, N), jnp.float32),
        grid=(pl.cdiv(M, tm_eff),),
        in_specs=[pl.BlockSpec((tm_eff, K), lambda i: (i, 0)),
                  pl.BlockSpec((K, N), lambda i: (0, 0)),
                  pl.BlockSpec((1, N), lambda i: (0, 0))],
        out_specs=pl.BlockSpec((tm_eff, N), lambda i: (i, 0)),
        compiler_params=pltpu.CompilerParams(dimension_semantics=("parallel",)),
    )(x2, w, b2)
    return out.reshape(*shp[:-1], N)


def _mm3_bias_kernel(x_ref, w_ref, b_ref, o_ref):
    o_ref[0] = (jnp.dot(x_ref[0], w_ref[0],
                        preferred_element_type=jnp.float32) + b_ref[0])


def pallas_linear3(x3, w3, b3, tm=256):
    """Three same-shape Linears (Lq/Lk/Lv) fused into one pallas_call.

    grid = (linear-id, row-tile); both axes are 'parallel'.
    """
    G, M, K = x3.shape
    N = w3.shape[2]
    tm_eff = M if M <= tm else tm
    return pl.pallas_call(
        _mm3_bias_kernel,
        out_shape=jax.ShapeDtypeStruct((G, M, N), jnp.float32),
        grid=(G, pl.cdiv(M, tm_eff)),
        in_specs=[pl.BlockSpec((1, tm_eff, K), lambda g, i: (g, i, 0)),
                  pl.BlockSpec((1, K, N), lambda g, i: (g, 0, 0)),
                  pl.BlockSpec((1, 1, N), lambda g, i: (g, 0, 0))],
        out_specs=pl.BlockSpec((1, tm_eff, N), lambda g, i: (g, i, 0)),
        compiler_params=pltpu.CompilerParams(
            dimension_semantics=("parallel", "parallel")),
    )(x3.astype(jnp.float32), w3.astype(jnp.float32), b3.astype(jnp.float32))


def _spectral_level_kernel(d_ref, x_ref, ert_ref, eit_ref, drt_ref, dit_ref,
                           awr_ref, awi_ref, bwr_ref, bwi_ref, cwr_ref, cwi_ref,
                           ud_ref, us_ref):
    """Fused per-level spectral mixing for one batch element.

    Computes Ud = A(d) + B(x) and Us = C(d) where A/B/C are sparseKernelFT1d with
    weights (awr+j*awi), (bwr+j*bwi), (cwr+j*cwi).  The forward DFTs of d and x are
    shared between A/B/C, and A(d)+B(x) is summed in the frequency domain so the
    inverse DFT of the Ud path runs once.
    """
    d2 = d_ref[0]                 # (Nh, CK)
    x2 = x_ref[0]                 # (Nh, CK)
    ert = ert_ref[...]
    eit = eit_ref[...]

    # shared truncated forward DFT (real/imag), on the MXU:  X^T : (l, CK)
    dXr = jnp.dot(ert, d2, preferred_element_type=jnp.float32)
    dXi = jnp.dot(eit, d2, preferred_element_type=jnp.float32)
    xXr = jnp.dot(ert, x2, preferred_element_type=jnp.float32)
    xXi = jnp.dot(eit, x2, preferred_element_type=jnp.float32)

    dXr3 = dXr[:, :, None]
    dXi3 = dXi[:, :, None]
    xXr3 = xXr[:, :, None]
    xXi3 = xXi[:, :, None]

    awr = awr_ref[...]; awi = awi_ref[...]
    bwr = bwr_ref[...]; bwi = bwi_ref[...]
    cwr = cwr_ref[...]; cwi = cwi_ref[...]

    # per-mode complex channel mix (einsum 'im,iom->om' per mode).
    # TODO(synk): at production c*k sizes replace with a batched rank-3 dot_general
    # ('lbi,lio->lbo') so this runs on the MXU instead of the VPU/XLU.
    yud_r = jnp.sum(dXr3 * awr - dXi3 * awi + xXr3 * bwr - xXi3 * bwi, axis=1)
    yud_i = jnp.sum(dXr3 * awi + dXi3 * awr + xXr3 * bwi + xXi3 * bwr, axis=1)
    yus_r = jnp.sum(dXr3 * cwr - dXi3 * cwi, axis=1)
    yus_i = jnp.sum(dXr3 * cwi + dXi3 * cwr, axis=1)

    drt = drt_ref[...]
    dit = dit_ref[...]
    ud_ref[0] = (jnp.dot(drt, yud_r, preferred_element_type=jnp.float32)
                 + jnp.dot(dit, yud_i, preferred_element_type=jnp.float32))
    us_ref[0] = (jnp.dot(drt, yus_r, preferred_element_type=jnp.float32)
                 + jnp.dot(dit, yus_i, preferred_element_type=jnp.float32))


def spectral_level(d, x, cz, modes):
    """One MWT_CZ1d level: returns (A(d)+B(x), C(d)), both (B, Nh, c, k)."""
    B, Nh, c, kk = d.shape
    CK = c * kk
    l = min(modes, Nh // 2 + 1)
    ert, eit, drt, dit = get_dft_mats(Nh, l)

    awr, awi = cz['A_wrt'][:l], cz['A_wit'][:l]
    bwr, bwi = cz['B_wrt'][:l], cz['B_wit'][:l]
    cwr, cwi = cz['C_wrt'][:l], cz['C_wit'][:l]

    d2 = d.reshape(B, Nh, CK)
    x2 = x.reshape(B, Nh, CK)

    data_spec = pl.BlockSpec((1, Nh, CK), lambda b: (b, 0, 0))
    w_spec = pl.BlockSpec((l, CK, CK), lambda b: (0, 0, 0))

    ud, us = pl.pallas_call(
        _spectral_level_kernel,
        out_shape=(jax.ShapeDtypeStruct((B, Nh, CK), jnp.float32),
                   jax.ShapeDtypeStruct((B, Nh, CK), jnp.float32)),
        grid=(B,),
        in_specs=[data_spec,
                  data_spec,
                  pl.BlockSpec((l, Nh), lambda b: (0, 0)),
                  pl.BlockSpec((l, Nh), lambda b: (0, 0)),
                  pl.BlockSpec((Nh, l), lambda b: (0, 0)),
                  pl.BlockSpec((Nh, l), lambda b: (0, 0)),
                  w_spec, w_spec, w_spec, w_spec, w_spec, w_spec],
        out_specs=(data_spec, data_spec),
        compiler_params=pltpu.CompilerParams(dimension_semantics=("parallel",)),
    )(d2, x2, ert, eit, drt, dit, awr, awi, bwr, bwi, cwr, cwi)

    return ud.reshape(B, Nh, c, kk), us.reshape(B, Nh, c, kk)


# ----------------------------------------------------------------------------
# Cached DFT / IDFT matrices (exact replicas of naive_rfft / naive_irfft)
# ----------------------------------------------------------------------------

@lru_cache(maxsize=None)
def _dft_mats_np(N, l):
    n = np.arange(N)
    m = np.arange(l)
    ang_f = 2.0 * np.pi * np.outer(m, n) / N                 # (l, N)
    ert = np.cos(ang_f)                                      # Re{e^{-2pi i m n / N}}
    eit = -np.sin(ang_f)                                     # Im{...}
    # inverse one-sided real DFT folded into two real matrices (hermitian extension
    # accounted for with the factor-of-2 on interior modes).
    coef = np.full((l,), 2.0)
    coef[0] = 1.0
    if N % 2 == 0 and l == N // 2 + 1:
        coef[-1] = 1.0
    ang_i = 2.0 * np.pi * np.outer(n, m) / N                 # (N, l)
    drt = coef[None, :] * np.cos(ang_i) / N
    dit = -coef[None, :] * np.sin(ang_i) / N
    return (ert.astype(np.float32), eit.astype(np.float32),
            drt.astype(np.float32), dit.astype(np.float32))


def get_dft_mats(N, l):
    ert, eit, drt, dit = _dft_mats_np(N, l)
    return jnp.asarray(ert), jnp.asarray(eit), jnp.asarray(drt), jnp.asarray(dit)


# ----------------------------------------------------------------------------
# Module building blocks (layout glue + tiny matmuls in plain JAX, heavy in Pallas)
# ----------------------------------------------------------------------------

def wavelet_transform(x, ec_d, ec_s):
    """d, s = xa @ ec_d, xa @ ec_s — the two (2k,k) filters fused into one matmul."""
    xa = jnp.concatenate([x[:, ::2], x[:, 1::2]], axis=-1)    # (B, Nh, c, 2k)
    kk = ec_d.shape[1]
    ds = xa @ jnp.concatenate([ec_d, ec_s], axis=-1)          # (B, Nh, c, 2k)
    return ds[..., :kk], ds[..., kk:]


def even_odd(x, rc_e, rc_o, kk):
    """MWT_CZ1d.evenOdd: rc_e/rc_o fused into one (2k,2k) matmul + interleave."""
    B, Nh, c, ich = x.shape
    eo = x @ jnp.concatenate([rc_e, rc_o], axis=-1)           # (B, Nh, c, 2k)
    x_e, x_o = eo[..., :kk], eo[..., kk:]
    return jnp.stack([x_e, x_o], axis=2).reshape(B, Nh * 2, c, kk)


def mwt_cz_forward(x, cz, filters, kk, L=0):
    """MWT_CZ1d.forward with the per-level A/B/C spectral mixes fused per level."""
    B, N, c, _ = x.shape
    ec_d, ec_s, rc_e, rc_o = filters
    ns = int(math.floor(math.log2(N)))
    nl = 2 ** int(math.ceil(math.log2(N)))
    if nl > N:
        x = jnp.concatenate([x, x[:, :nl - N]], axis=1)
    Ud, Us = [], []
    for _ in range(ns - L):
        d, x = wavelet_transform(x, ec_d, ec_s)
        ud, us = spectral_level(d, x, cz, ALPHA)
        Ud.append(ud)
        Us.append(us)
    # (k,k) linear: far below an (8,128) tile -> leave to XLA (per perf review).
    x = x @ cz['T0_w'] + cz['T0_b']
    for i in range(ns - 1 - L, -1, -1):
        x = x + Us[i]
        x = jnp.concatenate([x, Ud[i]], axis=-1)
        x = even_odd(x, rc_e, rc_o, kk)
    return x[:, :N]


def mwt_attn(queries, values, p, filters, c, kk, L=0):
    """MultiWaveletTransform.forward (nCZ=1).

    Keys never influence the reference output, so they are not passed in; queries
    only provide the target length / padding semantics.
    """
    B, Lq = queries.shape[0], queries.shape[1]
    S = values.shape[1]
    D = values.shape[-1]
    if Lq > S:
        zeros = jnp.zeros((B, Lq - S) + values.shape[2:], jnp.float32)
        values = jnp.concatenate([values, zeros], axis=1)
    else:
        values = values[:, :Lq]
    V = values.reshape(B, Lq, -1)
    V = pallas_linear(V, p['Lk0_w'], p['Lk0_b']).reshape(B, Lq, c, -1)
    V = mwt_cz_forward(V, p['cz'], filters, kk, L)
    V = pallas_linear(V.reshape(B, Lq, -1), p['Lk1_w'], p['Lk1_b'])
    return V.reshape(B, Lq, -1, D)


@partial(jax.jit, static_argnames=('c', 'kk', 'L'))
def multiwavelet_cross_forward(q, k, v, params, c, kk, L=0):
    filters = params['filters']
    ec_d, ec_s, rc_e, rc_o = filters

    B, N, H, E = q.shape
    S = k.shape[1]
    qf = q.reshape(B, N, -1)
    kf = k.reshape(B, S, -1)
    vf = v.reshape(B, S, -1)

    if N == S:
        # Lq / Lk / Lv fused into one pallas_call (same shapes).
        x3 = jnp.stack([qf, kf, vf], axis=0).reshape(3, B * N, -1)
        w3 = jnp.stack([params['Lq_w'], params['Lk_w'], params['Lv_w']], axis=0)
        b3 = jnp.stack([params['Lq_b'], params['Lk_b'], params['Lv_b']],
                       axis=0)[:, None, :]
        qkv = pallas_linear3(x3, w3, b3)
        qx = qkv[0].reshape(B, N, c, kk)
        kx = qkv[1].reshape(B, S, c, kk)
        vx = qkv[2].reshape(B, S, c, kk)
    else:
        qx = pallas_linear(qf, params['Lq_w'], params['Lq_b']).reshape(B, N, c, kk)
        kx = pallas_linear(kf, params['Lk_w'], params['Lk_b']).reshape(B, S, c, kk)
        vx = pallas_linear(vf, params['Lv_w'], params['Lv_b']).reshape(B, S, c, kk)

    if N > S:
        zeros = jnp.zeros((B, N - S, c, kk), jnp.float32)
        vx = jnp.concatenate([vx, zeros], axis=1)
        kx = jnp.concatenate([kx, zeros], axis=1)
    else:
        vx = vx[:, :N]
        kx = kx[:, :N]
    del kx  # keys never influence the output of the reference module

    ns = int(math.floor(math.log2(N)))
    nl = 2 ** int(math.ceil(math.log2(N)))
    if nl > N:
        qx = jnp.concatenate([qx, qx[:, :nl - N]], axis=1)
        vx = jnp.concatenate([vx, vx[:, :nl - N]], axis=1)

    # multiwavelet decomposition of q (only lengths matter downstream) and v (data);
    # the keys decomposition is skipped because it is dead compute in the reference.
    Ud_q, Us_q, Ud_v, Us_v = [], [], [], []
    for _ in range(ns - L):
        dq, qx = wavelet_transform(qx, ec_d, ec_s)
        Ud_q.append((dq, qx))
        Us_q.append(dq)
    for _ in range(ns - L):
        dv, vx = wavelet_transform(vx, ec_d, ec_s)
        Ud_v.append((dv, vx))
        Us_v.append(dv)

    Ud, Us = [], []
    for i in range(ns - L):
        dq, sq = Ud_q[i], Us_q[i]
        dv, sv = Ud_v[i], Us_v[i]
        Ud.append(mwt_attn(dq[0], dv[0], params['attn1'], filters, c, kk, L)
                  + mwt_attn(dq[1], dv[1], params['attn2'], filters, c, kk, L))
        Us.append(mwt_attn(sq, sv, params['attn3'], filters, c, kk, L))

    v_out = mwt_attn(qx, vx, params['attn4'], filters, c, kk, L)
    for i in range(ns - 1 - L, -1, -1):
        v_out = v_out + Us[i]
        v_out = jnp.concatenate([v_out, Ud[i]], axis=-1)
        v_out = even_odd(v_out, rc_e, rc_o, kk)
    v_out = v_out[:, :N]
    return pallas_linear(v_out.reshape(B, N, -1), params['out_w'], params['out_b'])


# ----------------------------------------------------------------------------
# Deterministic parameter construction
# ----------------------------------------------------------------------------

def init_params(ich, c, kk, seed=0):
    rng = np.random.default_rng(seed)
    ck = c * kk

    def lin(inp, outp):
        bound = 1.0 / math.sqrt(inp)
        w = rng.uniform(-bound, bound, size=(inp, outp)).astype(np.float32)
        b = rng.uniform(-bound, bound, size=(outp,)).astype(np.float32)
        return jnp.asarray(w), jnp.asarray(b)

    def filt():
        # TODO(synk): replace with get_filter('legendre', k) (needs sympy/scipy).
        m = (rng.standard_normal((2 * kk, kk)) / math.sqrt(2 * kk)).astype(np.float32)
        return jnp.asarray(m)

    # shared across the top module and every nested MWT_CZ1d (the reference's
    # get_filter returns identical buffers each time).
    filters = (filt(), filt(), filt(), filt())   # ec_d, ec_s, rc_e, rc_o

    scale = 1.0 / (ck * ck)

    def spectral_w():
        # stored pre-transposed to (modes, ck_in, ck_out) for the fused level kernel.
        wr = (scale * rng.standard_normal((ck, ck, ALPHA))).astype(np.float32)
        wi = (scale * rng.standard_normal((ck, ck, ALPHA))).astype(np.float32)
        return (jnp.asarray(np.ascontiguousarray(np.transpose(wr, (2, 0, 1)))),
                jnp.asarray(np.ascontiguousarray(np.transpose(wi, (2, 0, 1)))))

    def attn_params():
        Lk0_w, Lk0_b = lin(ck, ck)
        Lk1_w, Lk1_b = lin(ck, ck)
        A_wrt, A_wit = spectral_w()
        B_wrt, B_wit = spectral_w()
        C_wrt, C_wit = spectral_w()
        T0_w, T0_b = lin(kk, kk)
        return dict(Lk0_w=Lk0_w, Lk0_b=Lk0_b, Lk1_w=Lk1_w, Lk1_b=Lk1_b,
                    cz=dict(A_wrt=A_wrt, A_wit=A_wit, B_wrt=B_wrt, B_wit=B_wit,
                            C_wrt=C_wrt, C_wit=C_wit, T0_w=T0_w, T0_b=T0_b))

    Lq_w, Lq_b = lin(ich, ck)
    Lk_w, Lk_b = lin(ich, ck)
    Lv_w, Lv_b = lin(ich, ck)
    out_w, out_b = lin(ck, ich)

    return dict(filters=filters,
                Lq_w=Lq_w, Lq_b=Lq_b, Lk_w=Lk_w, Lk_b=Lk_b,
                Lv_w=Lv_w, Lv_b=Lv_b, out_w=out_w, out_b=out_b,
                attn1=attn_params(), attn2=attn_params(),
                attn3=attn_params(), attn4=attn_params())


# ----------------------------------------------------------------------------
# main
# ----------------------------------------------------------------------------

if __name__ == "__main__":
    # Small, consistent shapes: q/k/v are (B, L, H, E) with H*E == ich == c*k.
    B, N, S = 2, 8, 8
    H, E = 4, 4                 # ich = 16
    c, kk = 4, 4                # c*k = 16
    ich = H * E

    params = init_params(ich=ich, c=c, kk=kk, seed=0)

    key = jax.random.PRNGKey(0)
    kq, kk_key, kv = jax.random.split(key, 3)
    q = jax.random.normal(kq, (B, N, H, E), dtype=jnp.float32)
    k = jax.random.normal(kk_key, (B, S, H, E), dtype=jnp.float32)
    v = jax.random.normal(kv, (B, S, H, E), dtype=jnp.float32)

    out = multiwavelet_cross_forward(q, k, v, params, c=c, kk=kk, L=0)
    out = jax.block_until_ready(out)
    assert out.shape == (B, N, ich), out.shape
    assert bool(jnp.all(jnp.isfinite(out)))
    print("KERNEL_OK")
</pallas_src>

<mosaic_0001>
module attributes {stable_mosaic.version = 11 : i64} {
  func.func @_mm3_bias_kernel(%arg0: i32, %arg1: i32, %arg2: memref<1x16x16xf32, #tpu.memory_space<vmem>>, %arg3: memref<1x16x16xf32, #tpu.memory_space<vmem>>, %arg4: memref<1x1x16xf32, #tpu.memory_space<vmem>>, %arg5: memref<1x16x16xf32, #tpu.memory_space<vmem>>) attributes {dimension_semantics = [#tpu.dimension_semantics<parallel>, #tpu.dimension_semantics<parallel>], iteration_bounds = array<i64: 3, 1>, scalar_prefetch = 0 : i64, scratch_operands = 0 : i64, tpu.core_type = #tpu.core_type<tc>, window_params = [{transform_indices = @transform_0, window_bounds = array<i64: 1, 16, 16>}, {transform_indices = @transform_1, window_bounds = array<i64: 1, 16, 16>}, {transform_indices = @transform_2, window_bounds = array<i64: 1, 1, 16>}, {transform_indices = @transform_3, window_bounds = array<i64: 1, 16, 16>}]} {
    %c0 = arith.constant 0 : index
    %c0_0 = arith.constant 0 : index
    %c0_1 = arith.constant 0 : index
    %0 = vector.load %arg2[%c0, %c0_0, %c0_1] : memref<1x16x16xf32, #tpu.memory_space<vmem>>, vector<1x16x16xf32>
    %1 = vector.shape_cast %0 : vector<1x16x16xf32> to vector<16x16xf32>
    %c0_2 = arith.constant 0 : index
    %c0_3 = arith.constant 0 : index
    %c0_4 = arith.constant 0 : index
    %2 = vector.load %arg3[%c0_2, %c0_3, %c0_4] : memref<1x16x16xf32, #tpu.memory_space<vmem>>, vector<1x16x16xf32>
    %3 = vector.shape_cast %2 : vector<1x16x16xf32> to vector<16x16xf32>
    %cst = arith.constant dense<0.000000e+00> : vector<16x16xf32>
    %4 = tpu.matmul %1, %3, %cst {dimension_numbers = #tpu.dot_dimension_numbers<[1], [0], [0], [1], [0, 0, 1, 1], [], []>} : vector<16x16xf32>, vector<16x16xf32>, vector<16x16xf32> -> vector<16x16xf32>
    %c0_5 = arith.constant 0 : index
    %c0_6 = arith.constant 0 : index
    %c0_7 = arith.constant 0 : index
    %5 = vector.load %arg4[%c0_5, %c0_6, %c0_7] : memref<1x1x16xf32, #tpu.memory_space<vmem>>, vector<1x1x16xf32>
    %6 = vector.shape_cast %5 : vector<1x1x16xf32> to vector<1x16xf32>
    %7 = vector.broadcast %6 : vector<1x16xf32> to vector<16x16xf32>
    %8 = arith.addf %4, %7 : vector<16x16xf32>
    %c0_8 = arith.constant 0 : index
    %c0_9 = arith.constant 0 : index
    %c0_10 = arith.constant 0 : index
    %9 = vector.load %arg5[%c0_8, %c0_9, %c0_10] : memref<1x16x16xf32, #tpu.memory_space<vmem>>, vector<1x16x16xf32>
    %10 = vector.shape_cast %9 : vector<1x16x16xf32> to vector<16x16xf32>
    %11 = vector.shape_cast %8 : vector<16x16xf32> to vector<1x16x16xf32>
    tpu.vector_store %arg5[%c0_8, %c0_9, %c0_10], %11 {strides = array<i32>} : memref<1x16x16xf32, #tpu.memory_space<vmem>>, vector<1x16x16xf32>,
    return
  }
  func.func @transform_0(%arg0: i32, %arg1: i32) -> (i32, i32, i32) {
    %c0_i32 = arith.constant 0 : i32
    %c0_i32_0 = arith.constant 0 : i32
    return %arg0, %arg1, %c0_i32 : i32, i32, i32
  }
  func.func @transform_1(%arg0: i32, %arg1: i32) -> (i32, i32, i32) {
    %c0_i32 = arith.constant 0 : i32
    %c0_i32_0 = arith.constant 0 : i32
    %c0_i32_1 = arith.constant 0 : i32
    return %arg0, %c0_i32, %c0_i32_0 : i32, i32, i32
  }
  func.func @transform_2(%arg0: i32, %arg1: i32) -> (i32, i32, i32) {
    %c0_i32 = arith.constant 0 : i32
    %c0_i32_0 = arith.constant 0 : i32
    %c0_i32_1 = arith.constant 0 : i32
    return %arg0, %c0_i32, %c0_i32_0 : i32, i32, i32
  }
  func.func @transform_3(%arg0: i32, %arg1: i32) -> (i32, i32, i32) {
    %c0_i32 = arith.constant 0 : i32
    %c0_i32_0 = arith.constant 0 : i32
    return %arg0, %arg1, %c0_i32 : i32, i32, i32
  }
}

module attributes {stable_mosaic.version = 11 : i64} {
  func.func @_mm_bias_kernel(%arg0: i32, %arg1: memref<8x16xf32, #tpu.memory_space<vmem>>, %arg2: memref<16x16xf32, #tpu.memory_space<vmem>>, %arg3: memref<1x16xf32, #tpu.memory_space<vmem>>, %arg4: memref<8x16xf32, #tpu.memory_space<vmem>>) attributes {dimension_semantics = [#tpu.dimension_semantics<parallel>], iteration_bounds = array<i64: 1>, scalar_prefetch = 0 : i64, scratch_operands = 0 : i64, tpu.core_type = #tpu.core_type<tc>, window_params = [{transform_indices = @transform_0, window_bounds = array<i64: 8, 16>}, {pipeline_mode = #tpu.pipeline_mode<synchronous>, transform_indices = @transform_1, window_bounds = array<i64: 16, 16>}, {pipeline_mode = #tpu.pipeline_mode<synchronous>, transform_indices = @transform_2, window_bounds = array<i64: 1, 16>}, {transform_indices = @transform_3, window_bounds = array<i64: 8, 16>}]} {
    %c0 = arith.constant 0 : index
    %c0_0 = arith.constant 0 : index
    %0 = vector.load %arg1[%c0, %c0_0] : memref<8x16xf32, #tpu.memory_space<vmem>>, vector<8x16xf32>
    %c0_1 = arith.constant 0 : index
    %c0_2 = arith.constant 0 : index
    %1 = vector.load %arg2[%c0_1, %c0_2] : memref<16x16xf32, #tpu.memory_space<vmem>>, vector<16x16xf32>
    %cst = arith.constant dense<0.000000e+00> : vector<8x16xf32>
    %2 = tpu.matmul %0, %1, %cst {dimension_numbers = #tpu.dot_dimension_numbers<[1], [0], [0], [1], [0, 0, 1, 1], [], []>} : vector<8x16xf32>, vector<16x16xf32>, vector<8x16xf32> -> vector<8x16xf32>
    %c0_3 = arith.constant 0 : index
    %c0_4 = arith.constant 0 : index
    %3 = vector.load %arg3[%c0_3, %c0_4] : memref<1x16xf32, #tpu.memory_space<vmem>>, vector<1x16xf32>
    %4 = vector.broadcast %3 : vector<1x16xf32> to vector<8x16xf32>
    %5 = arith.addf %2, %4 : vector<8x16xf32>
    %c0_5 = arith.constant 0 : index
    %c0_6 = arith.constant 0 : index
    %6 = vector.load %arg4[%c0_5, %c0_6] : memref<8x16xf32, #tpu.memory_space<vmem>>, vector<8x16xf32>
    tpu.vector_store %arg4[%c0_5, %c0_6], %5 {strides = array<i32>} : memref<8x16xf32, #tpu.memory_space<vmem>>, vector<8x16xf32>,
    return
  }
  func.func @transform_0(%arg0: i32) -> (i32, i32) {
    %c0_i32 = arith.constant 0 : i32
    %c0_i32_0 = arith.constant 0 : i32
    return %arg0, %c0_i32 : i32, i32
  }
  func.func @transform_1(%arg0: i32) -> (i32, i32) {
    %c0_i32 = arith.constant 0 : i32
    %c0_i32_0 = arith.constant 0 : i32
    %c0_i32_1 = arith.constant 0 : i32
    return %c0_i32, %c0_i32_0 : i32, i32
  }
  func.func @transform_2(%arg0: i32) -> (i32, i32) {
    %c0_i32 = arith.constant 0 : i32
    %c0_i32_0 = arith.constant 0 : i32
    %c0_i32_1 = arith.constant 0 : i32
    return %c0_i32, %c0_i32_0 : i32, i32
  }
  func.func @transform_3(%arg0: i32) -> (i32, i32) {
    %c0_i32 = arith.constant 0 : i32
    %c0_i32_0 = arith.constant 0 : i32
    return %arg0, %c0_i32 : i32, i32
  }
}

module attributes {stable_mosaic.version = 11 : i64} {
  func.func @_spectral_level_kernel(%arg0: i32, %arg1: memref<1x1x16xf32, #tpu.memory_space<vmem>>, %arg2: memref<1x1x16xf32, #tpu.memory_space<vmem>>, %arg3: memref<1x1xf32, #tpu.memory_space<vmem>>, %arg4: memref<1x1xf32, #tpu.memory_space<vmem>>, %arg5: memref<1x1xf32, #tpu.memory_space<vmem>>, %arg6: memref<1x1xf32, #tpu.memory_space<vmem>>, %arg7: memref<1x16x16xf32, #tpu.memory_space<vmem>>, %arg8: memref<1x16x16xf32, #tpu.memory_space<vmem>>, %arg9: memref<1x16x16xf32, #tpu.memory_space<vmem>>, %arg10: memref<1x16x16xf32, #tpu.memory_space<vmem>>, %arg11: memref<1x16x16xf32, #tpu.memory_space<vmem>>, %arg12: memref<1x16x16xf32, #tpu.memory_space<vmem>>, %arg13: memref<1x1x16xf32, #tpu.memory_space<vmem>>, %arg14: memref<1x1x16xf32, #tpu.memory_space<vmem>>) attributes {dimension_semantics = [#tpu.dimension_semantics<parallel>], iteration_bounds = array<i64: 2>, scalar_prefetch = 0 : i64, scratch_operands = 0 : i64, tpu.core_type = #tpu.core_type<tc>, window_params = [{transform_indices = @transform_0, window_bounds = array<i64: 1, 1, 16>}, {transform_indices = @transform_1, window_bounds = array<i64: 1, 1, 16>}, {pipeline_mode = #tpu.pipeline_mode<synchronous>, transform_indices = @transform_2, window_bounds = array<i64: 1, 1>}, {pipeline_mode = #tpu.pipeline_mode<synchronous>, transform_indices = @transform_3, window_bounds = array<i64: 1, 1>}, {pipeline_mode = #tpu.pipeline_mode<synchronous>, transform_indices = @transform_4, window_bounds = array<i64: 1, 1>}, {pipeline_mode = #tpu.pipeline_mode<synchronous>, transform_indices = @transform_5, window_bounds = array<i64: 1, 1>}, {pipeline_mode = #tpu.pipeline_mode<synchronous>, transform_indices = @transform_6, window_bounds = array<i64: 1, 16, 16>}, {pipeline_mode = #tpu.pipeline_mode<synchronous>, transform_indices = @transform_7, window_bounds = array<i64: 1, 16, 16>}, {pipeline_mode = #tpu.pipeline_mode<synchronous>, transform_indices = @transform_8, window_bounds = array<i64: 1, 16, 16>}, {pipeline_mode = #tpu.pipeline_mode<synchronous>, transform_indices = @transform_9, window_bounds = array<i64: 1, 16, 16>}, {pipeline_mode = #tpu.pipeline_mode<synchronous>, transform_indices = @transform_10, window_bounds = array<i64: 1, 16, 16>}, {pipeline_mode = #tpu.pipeline_mode<synchronous>, transform_indices = @transform_11, window_bounds = array<i64: 1, 16, 16>}, {transform_indices = @transform_12, window_bounds = array<i64: 1, 1, 16>}, {transform_indices = @transform_13, window_bounds = array<i64: 1, 1, 16>}]} {
    %c0 = arith.constant 0 : index
    %c0_0 = arith.constant 0 : index
    %c0_1 = arith.constant 0 : index
    %0 = vector.load %arg1[%c0, %c0_0, %c0_1] : memref<1x1x16xf32, #tpu.memory_space<vmem>>, vector<1x1x16xf32>
    %1 = vector.shape_cast %0 : vector<1x1x16xf32> to vector<1x16xf32>
    %c0_2 = arith.constant 0 : index
    %c0_3 = arith.constant 0 : index
    %c0_4 = arith.constant 0 : index
    %2 = vector.load %arg2[%c0_2, %c0_3, %c0_4] : memref<1x1x16xf32, #tpu.memory_space<vmem>>, vector<1x1x16xf32>
    %3 = vector.shape_cast %2 : vector<1x1x16xf32> to vector<1x16xf32>
    %c0_5 = arith.constant 0 : index
    %c0_6 = arith.constant 0 : index
    %4 = vector.load %arg3[%c0_5, %c0_6] : memref<1x1xf32, #tpu.memory_space<vmem>>, vector<1x1xf32>
    %c0_7 = arith.constant 0 : index
    %c0_8 = arith.constant 0 : index
    %5 = vector.load %arg4[%c0_7, %c0_8] : memref<1x1xf32, #tpu.memory_space<vmem>>, vector<1x1xf32>
    %cst = arith.constant dense<0.000000e+00> : vector<1x16xf32>
    %6 = tpu.matmul %4, %1, %cst {dimension_numbers = #tpu.dot_dimension_numbers<[1], [0], [0], [1], [0, 0, 1, 1], [], []>} : vector<1x1xf32>, vector<1x16xf32>, vector<1x16xf32> -> vector<1x16xf32>
    %cst_9 = arith.constant dense<0.000000e+00> : vector<1x16xf32>
    %7 = tpu.matmul %5, %1, %cst_9 {dimension_numbers = #tpu.dot_dimension_numbers<[1], [0], [0], [1], [0, 0, 1, 1], [], []>} : vector<1x1xf32>, vector<1x16xf32>, vector<1x16xf32> -> vector<1x16xf32>
    %cst_10 = arith.constant dense<0.000000e+00> : vector<1x16xf32>
    %8 = tpu.matmul %4, %3, %cst_10 {dimension_numbers = #tpu.dot_dimension_numbers<[1], [0], [0], [1], [0, 0, 1, 1], [], []>} : vector<1x1xf32>, vector<1x16xf32>, vector<1x16xf32> -> vector<1x16xf32>
    %cst_11 = arith.constant dense<0.000000e+00> : vector<1x16xf32>
    %9 = tpu.matmul %5, %3, %cst_11 {dimension_numbers = #tpu.dot_dimension_numbers<[1], [0], [0], [1], [0, 0, 1, 1], [], []>} : vector<1x1xf32>, vector<1x16xf32>, vector<1x16xf32> -> vector<1x16xf32>
    %10 = vector.shape_cast %6 : vector<1x16xf32> to vector<1x16x1xf32>
    %11 = vector.shape_cast %7 : vector<1x16xf32> to vector<1x16x1xf32>
    %12 = vector.shape_cast %8 : vector<1x16xf32> to vector<1x16x1xf32>
    %13 = vector.shape_cast %9 : vector<1x16xf32> to vector<1x16x1xf32>
    %c0_12 = arith.constant 0 : index
    %c0_13 = arith.constant 0 : index
    %c0_14 = arith.constant 0 : index
    %14 = vector.load %arg7[%c0_12, %c0_13, %c0_14] : memref<1x16x16xf32, #tpu.memory_space<vmem>>, vector<1x16x16xf32>
    %c0_15 = arith.constant 0 : index
    %c0_16 = arith.constant 0 : index
    %c0_17 = arith.constant 0 : index
    %15 = vector.load %arg8[%c0_15, %c0_16, %c0_17] : memref<1x16x16xf32, #tpu.memory_space<vmem>>, vector<1x16x16xf32>
    %c0_18 = arith.constant 0 : index
    %c0_19 = arith.constant 0 : index
    %c0_20 = arith.constant 0 : index
    %16 = vector.load %arg9[%c0_18, %c0_19, %c0_20] : memref<1x16x16xf32, #tpu.memory_space<vmem>>, vector<1x16x16xf32>
    %c0_21 = arith.constant 0 : index
    %c0_22 = arith.constant 0 : index
    %c0_23 = arith.constant 0 : index
    %17 = vector.load %arg10[%c0_21, %c0_22, %c0_23] : memref<1x16x16xf32, #tpu.memory_space<vmem>>, vector<1x16x16xf32>
    %c0_24 = arith.constant 0 : index
    %c0_25 = arith.constant 0 : index
    %c0_26 = arith.constant 0 : index
    %18 = vector.load %arg11[%c0_24, %c0_25, %c0_26] : memref<1x16x16xf32, #tpu.memory_space<vmem>>, vector<1x16x16xf32>
    %c0_27 = arith.constant 0 : index
    %c0_28 = arith.constant 0 : index
    %c0_29 = arith.constant 0 : index
    %19 = vector.load %arg12[%c0_27, %c0_28, %c0_29] : memref<1x16x16xf32, #tpu.memory_space<vmem>>, vector<1x16x16xf32>
    %20 = vector.broadcast %10 : vector<1x16x1xf32> to vector<1x16x16xf32>
    %21 = arith.mulf %20, %14 : vector<1x16x16xf32>
    %22 = vector.broadcast %11 : vector<1x16x1xf32> to vector<1x16x16xf32>
    %23 = arith.mulf %22, %15 : vector<1x16x16xf32>
    %24 = arith.subf %21, %23 : vector<1x16x16xf32>
    %25 = vector.broadcast %12 : vector<1x16x1xf32> to vector<1x16x16xf32>
    %26 = arith.mulf %25, %16 : vector<1x16x16xf32>
    %27 = arith.addf %24, %26 : vector<1x16x16xf32>
    %28 = vector.broadcast %13 : vector<1x16x1xf32> to vector<1x16x16xf32>
    %29 = arith.mulf %28, %17 : vector<1x16x16xf32>
    %30 = arith.subf %27, %29 : vector<1x16x16xf32>
    %cst_30 = arith.constant dense<0.000000e+00> : vector<1x16xf32>
    %31 = vector.multi_reduction <add>, %30, %cst_30 [1] : vector<1x16x16xf32> to vector<1x16xf32>
    %32 = vector.broadcast %10 : vector<1x16x1xf32> to vector<1x16x16xf32>
    %33 = arith.mulf %32, %15 : vector<1x16x16xf32>
    %34 = vector.broadcast %11 : vector<1x16x1xf32> to vector<1x16x16xf32>
    %35 = arith.mulf %34, %14 : vector<1x16x16xf32>
    %36 = arith.addf %33, %35 : vector<1x16x16xf32>
    %37 = vector.broadcast %12 : vector<1x16x1xf32> to vector<1x16x16xf32>
    %38 = arith.mulf %37, %17 : vector<1x16x16xf32>
    %39 = arith.addf %36, %38 : vector<1x16x16xf32>
    %40 = vector.broadcast %13 : vector<1x16x1xf32> to vector<1x16x16xf32>
    %41 = arith.mulf %40, %16 : vector<1x16x16xf32>
    %42 = arith.addf %39, %41 : vector<1x16x16xf32>
    %cst_31 = arith.constant dense<0.000000e+00> : vector<1x16xf32>
    %43 = vector.multi_reduction <add>, %42, %cst_31 [1] : vector<1x16x16xf32> to vector<1x16xf32>
    %44 = vector.broadcast %10 : vector<1x16x1xf32> to vector<1x16x16xf32>
    %45 = arith.mulf %44, %18 : vector<1x16x16xf32>
    %46 = vector.broadcast %11 : vector<1x16x1xf32> to vector<1x16x16xf32>
    %47 = arith.mulf %46, %19 : vector<1x16x16xf32>
    %48 = arith.subf %45, %47 : vector<1x16x16xf32>
    %cst_32 = arith.constant dense<0.000000e+00> : vector<1x16xf32>
    %49 = vector.multi_reduction <add>, %48, %cst_32 [1] : vector<1x16x16xf32> to vector<1x16xf32>
    %50 = vector.broadcast %10 : vector<1x16x1xf32> to vector<1x16x16xf32>
    %51 = arith.mulf %50, %19 : vector<1x16x16xf32>
    %52 = vector.broadcast %11 : vector<1x16x1xf32> to vector<1x16x16xf32>
    %53 = arith.mulf %52, %18 : vector<1x16x16xf32>
    %54 = arith.addf %51, %53 : vector<1x16x16xf32>
    %cst_33 = arith.constant dense<0.000000e+00> : vector<1x16xf32>
    %55 = vector.multi_reduction <add>, %54, %cst_33 [1] : vector<1x16x16xf32> to vector<1x16xf32>
    %c0_34 = arith.constant 0 : index
    %c0_35 = arith.constant 0 : index
    %56 = vector.load %arg5[%c0_34, %c0_35] : memref<1x1xf32, #tpu.memory_space<vmem>>, vector<1x1xf32>
    %c0_36 = arith.constant 0 : index
    %c0_37 = arith.constant 0 : index
    %57 = vector.load %arg6[%c0_36, %c0_37] : memref<1x1xf32, #tpu.memory_space<vmem>>, vector<1x1xf32>
    %cst_38 = arith.constant dense<0.000000e+00> : vector<1x16xf32>
    %58 = tpu.matmul %56, %31, %cst_38 {dimension_numbers = #tpu.dot_dimension_numbers<[1], [0], [0], [1], [0, 0, 1, 1], [], []>} : vector<1x1xf32>, vector<1x16xf32>, vector<1x16xf32> -> vector<1x16xf32>
    %cst_39 = arith.constant dense<0.000000e+00> : vector<1x16xf32>
    %59 = tpu.matmul %57, %43, %cst_39 {dimension_numbers = #tpu.dot_dimension_numbers<[1], [0], [0], [1], [0, 0, 1, 1], [], []>} : vector<1x1xf32>, vector<1x16xf32>, vector<1x16xf32> -> vector<1x16xf32>
    %60 = arith.addf %58, %59 : vector<1x16xf32>
    %c0_40 = arith.constant 0 : index
    %c0_41 = arith.constant 0 : index
    %c0_42 = arith.constant 0 : index
    %61 = vector.load %arg13[%c0_40, %c0_41, %c0_42] : memref<1x1x16xf32, #tpu.memory_space<vmem>>, vector<1x1x16xf32>
    %62 = vector.shape_cast %61 : vector<1x1x16xf32> to vector<1x16xf32>
    %63 = vector.shape_cast %60 : vector<1x16xf32> to vector<1x1x16xf32>
    tpu.vector_store %arg13[%c0_40, %c0_41, %c0_42], %63 {strides = array<i32>} : memref<1x1x16xf32, #tpu.memory_space<vmem>>, vector<1x1x16xf32>,
    %cst_43 = arith.constant dense<0.000000e+00> : vector<1x16xf32>
    %64 = tpu.matmul %56, %49, %cst_43 {dimension_numbers = #tpu.dot_dimension_numbers<[1], [0], [0], [1], [0, 0, 1, 1], [], []>} : vector<1x1xf32>, vector<1x16xf32>, vector<1x16xf32> -> vector<1x16xf32>
    %cst_44 = arith.constant dense<0.000000e+00> : vector<1x16xf32>
    %65 = tpu.matmul %57, %55, %cst_44 {dimension_numbers = #tpu.dot_dimension_numbers<[1], [0], [0], [1], [0, 0, 1, 1], [], []>} : vector<1x1xf32>, vector<1x16xf32>, vector<1x16xf32> -> vector<1x16xf32>
    %66 = arith.addf %64, %65 : vector<1x16xf32>
    %c0_45 = arith.constant 0 : index
    %c0_46 = arith.constant 0 : index
    %c0_47 = arith.constant 0 : index
    %67 = vector.load %arg14[%c0_45, %c0_46, %c0_47] : memref<1x1x16xf32, #tpu.memory_space<vmem>>, vector<1x1x16xf32>
    %68 = vector.shape_cast %67 : vector<1x1x16xf32> to vector<1x16xf32>
    %69 = vector.shape_cast %66 : vector<1x16xf32> to vector<1x1x16xf32>
    tpu.vector_store %arg14[%c0_45, %c0_46, %c0_47], %69 {strides = array<i32>} : memref<1x1x16xf32, #tpu.memory_space<vmem>>, vector<1x1x16xf32>,
    return
  }
  func.func @transform_0(%arg0: i32) -> (i32, i32, i32) {
    %c0_i32 = arith.constant 0 : i32
    %c0_i32_0 = arith.constant 0 : i32
    %c0_i32_1 = arith.constant 0 : i32
    return %arg0, %c0_i32, %c0_i32_0 : i32, i32, i32
  }
  func.func @transform_1(%arg0: i32) -> (i32, i32, i32) {
    %c0_i32 = arith.constant 0 : i32
    %c0_i32_0 = arith.constant 0 : i32
    %c0_i32_1 = arith.constant 0 : i32
    return %arg0, %c0_i32, %c0_i32_0 : i32, i32, i32
  }
  func.func @transform_2(%arg0: i32) -> (i32, i32) {
    %c0_i32 = arith.constant 0 : i32
    %c0_i32_0 = arith.constant 0 : i32
    %c0_i32_1 = arith.constant 0 : i32
    return %c0_i32, %c0_i32_0 : i32, i32
  }
  func.func @transform_3(%arg0: i32) -> (i32, i32) {
    %c0_i32 = arith.constant 0 : i32
    %c0_i32_0 = arith.constant 0 : i32
    %c0_i32_1 = arith.constant 0 : i32
    return %c0_i32, %c0_i32_0 : i32, i32
  }
  func.func @transform_4(%arg0: i32) -> (i32, i32) {
    %c0_i32 = arith.constant 0 : i32
    %c0_i32_0 = arith.constant 0 : i32
    %c0_i32_1 = arith.constant 0 : i32
    return %c0_i32, %c0_i32_0 : i32, i32
  }
  func.func @transform_5(%arg0: i32) -> (i32, i32) {
    %c0_i32 = arith.constant 0 : i32
    %c0_i32_0 = arith.constant 0 : i32
    %c0_i32_1 = arith.constant 0 : i32
    return %c0_i32, %c0_i32_0 : i32, i32
  }
  func.func @transform_6(%arg0: i32) -> (i32, i32, i32) {
    %c0_i32 = arith.constant 0 : i32
    %c0_i32_0 = arith.constant 0 : i32
    %c0_i32_1 = arith.constant 0 : i32
    %c0_i32_2 = arith.constant 0 : i32
    return %c0_i32, %c0_i32_0, %c0_i32_1 : i32, i32, i32
  }
  func.func @transform_7(%arg0: i32) -> (i32, i32, i32) {
    %c0_i32 = arith.constant 0 : i32
    %c0_i32_0 = arith.constant 0 : i32
    %c0_i32_1 = arith.constant 0 : i32
    %c0_i32_2 = arith.constant 0 : i32
    return %c0_i32, %c0_i32_0, %c0_i32_1 : i32, i32, i32
  }
  func.func @transform_8(%arg0: i32) -> (i32, i32, i32) {
    %c0_i32 = arith.constant 0 : i32
    %c0_i32_0 = arith.constant 0 : i32
    %c0_i32_1 = arith.constant 0 : i32
    %c0_i32_2 = arith.constant 0 : i32
    return %c0_i32, %c0_i32_0, %c0_i32_1 : i32, i32, i32
  }
  func.func @transform_9(%arg0: i32) -> (i32, i32, i32) {
    %c0_i32 = arith.constant 0 : i32
    %c0_i32_0 = arith.constant 0 : i32
    %c0_i32_1 = arith.constant 0 : i32
    %c0_i32_2 = arith.constant 0 : i32
    return %c0_i32, %c0_i32_0, %c0_i32_1 : i32, i32, i32
  }
  func.func @transform_10(%arg0: i32) -> (i32, i32, i32) {
    %c0_i32 = arith.constant 0 : i32
    %c0_i32_0 = arith.constant 0 : i32
    %c0_i32_1 = arith.constant 0 : i32
    %c0_i32_2 = arith.constant 0 : i32
    return %c0_i32, %c0_i32_0, %c0_i32_1 : i32, i32, i32
  }
  func.func @transform_11(%arg0: i32) -> (i32, i32, i32) {
    %c0_i32 = arith.constant 0 : i32
    %c0_i32_0 = arith.constant 0 : i32
    %c0_i32_1 = arith.constant 0 : i32
    %c0_i32_2 = arith.constant 0 : i32
    return %c0_i32, %c0_i32_0, %c0_i32_1 : i32, i32, i32
  }
  func.func @transform_12(%arg0: i32) -> (i32, i32, i32) {
    %c0_i32 = arith.constant 0 : i32
    %c0_i32_0 = arith.constant 0 : i32
    %c0_i32_1 = arith.constant 0 : i32
    return %arg0, %c0_i32, %c0_i32_0 : i32, i32, i32
  }
  func.func @transform_13(%arg0: i32) -> (i32, i32, i32) {
    %c0_i32 = arith.constant 0 : i32
    %c0_i32_0 = arith.constant 0 : i32
    %c0_i32_1 = arith.constant 0 : i32
    return %arg0, %c0_i32, %c0_i32_0 : i32, i32, i32
  }
}

module attributes {stable_mosaic.version = 11 : i64} {
  func.func @_spectral_level_kernel(%arg0: i32, %arg1: memref<1x2x16xf32, #tpu.memory_space<vmem>>, %arg2: memref<1x2x16xf32, #tpu.memory_space<vmem>>, %arg3: memref<2x2xf32, #tpu.memory_space<vmem>>, %arg4: memref<2x2xf32, #tpu.memory_space<vmem>>, %arg5: memref<2x2xf32, #tpu.memory_space<vmem>>, %arg6: memref<2x2xf32, #tpu.memory_space<vmem>>, %arg7: memref<2x16x16xf32, #tpu.memory_space<vmem>>, %arg8: memref<2x16x16xf32, #tpu.memory_space<vmem>>, %arg9: memref<2x16x16xf32, #tpu.memory_space<vmem>>, %arg10: memref<2x16x16xf32, #tpu.memory_space<vmem>>, %arg11: memref<2x16x16xf32, #tpu.memory_space<vmem>>, %arg12: memref<2x16x16xf32, #tpu.memory_space<vmem>>, %arg13: memref<1x2x16xf32, #tpu.memory_space<vmem>>, %arg14: memref<1x2x16xf32, #tpu.memory_space<vmem>>) attributes {dimension_semantics = [#tpu.dimension_semantics<parallel>], iteration_bounds = array<i64: 2>, scalar_prefetch = 0 : i64, scratch_operands = 0 : i64, tpu.core_type = #tpu.core_type<tc>, window_params = [{transform_indices = @transform_0, window_bounds = array<i64: 1, 2, 16>}, {transform_indices = @transform_1, window_bounds = array<i64: 1, 2, 16>}, {pipeline_mode = #tpu.pipeline_mode<synchronous>, transform_indices = @transform_2, window_bounds = array<i64: 2, 2>}, {pipeline_mode = #tpu.pipeline_mode<synchronous>, transform_indices = @transform_3, window_bounds = array<i64: 2, 2>}, {pipeline_mode = #tpu.pipeline_mode<synchronous>, transform_indices = @transform_4, window_bounds = array<i64: 2, 2>}, {pipeline_mode = #tpu.pipeline_mode<synchronous>, transform_indices = @transform_5, window_bounds = array<i64: 2, 2>}, {pipeline_mode = #tpu.pipeline_mode<synchronous>, transform_indices = @transform_6, window_bounds = array<i64: 2, 16, 16>}, {pipeline_mode = #tpu.pipeline_mode<synchronous>, transform_indices = @transform_7, window_bounds = array<i64: 2, 16, 16>}, {pipeline_mode = #tpu.pipeline_mode<synchronous>, transform_indices = @transform_8, window_bounds = array<i64: 2, 16, 16>}, {pipeline_mode = #tpu.pipeline_mode<synchronous>, transform_indices = @transform_9, window_bounds = array<i64: 2, 16, 16>}, {pipeline_mode = #tpu.pipeline_mode<synchronous>, transform_indices = @transform_10, window_bounds = array<i64: 2, 16, 16>}, {pipeline_mode = #tpu.pipeline_mode<synchronous>, transform_indices = @transform_11, window_bounds = array<i64: 2, 16, 16>}, {transform_indices = @transform_12, window_bounds = array<i64: 1, 2, 16>}, {transform_indices = @transform_13, window_bounds = array<i64: 1, 2, 16>}]} {
    %c0 = arith.constant 0 : index
    %c0_0 = arith.constant 0 : index
    %c0_1 = arith.constant 0 : index
    %0 = vector.load %arg1[%c0, %c0_0, %c0_1] : memref<1x2x16xf32, #tpu.memory_space<vmem>>, vector<1x2x16xf32>
    %1 = vector.shape_cast %0 : vector<1x2x16xf32> to vector<2x16xf32>
    %c0_2 = arith.constant 0 : index
    %c0_3 = arith.constant 0 : index
    %c0_4 = arith.constant 0 : index
    %2 = vector.load %arg2[%c0_2, %c0_3, %c0_4] : memref<1x2x16xf32, #tpu.memory_space<vmem>>, vector<1x2x16xf32>
    %3 = vector.shape_cast %2 : vector<1x2x16xf32> to vector<2x16xf32>
    %c0_5 = arith.constant 0 : index
    %c0_6 = arith.constant 0 : index
    %4 = vector.load %arg3[%c0_5, %c0_6] : memref<2x2xf32, #tpu.memory_space<vmem>>, vector<2x2xf32>
    %c0_7 = arith.constant 0 : index
    %c0_8 = arith.constant 0 : index
    %5 = vector.load %arg4[%c0_7, %c0_8] : memref<2x2xf32, #tpu.memory_space<vmem>>, vector<2x2xf32>
    %cst = arith.constant dense<0.000000e+00> : vector<2x16xf32>
    %6 = tpu.matmul %4, %1, %cst {dimension_numbers = #tpu.dot_dimension_numbers<[1], [0], [0], [1], [0, 0, 1, 1], [], []>} : vector<2x2xf32>, vector<2x16xf32>, vector<2x16xf32> -> vector<2x16xf32>
    %cst_9 = arith.constant dense<0.000000e+00> : vector<2x16xf32>
    %7 = tpu.matmul %5, %1, %cst_9 {dimension_numbers = #tpu.dot_dimension_numbers<[1], [0], [0], [1], [0, 0, 1, 1], [], []>} : vector<2x2xf32>, vector<2x16xf32>, vector<2x16xf32> -> vector<2x16xf32>
    %cst_10 = arith.constant dense<0.000000e+00> : vector<2x16xf32>
    %8 = tpu.matmul %4, %3, %cst_10 {dimension_numbers = #tpu.dot_dimension_numbers<[1], [0], [0], [1], [0, 0, 1, 1], [], []>} : vector<2x2xf32>, vector<2x16xf32>, vector<2x16xf32> -> vector<2x16xf32>
    %cst_11 = arith.constant dense<0.000000e+00> : vector<2x16xf32>
    %9 = tpu.matmul %5, %3, %cst_11 {dimension_numbers = #tpu.dot_dimension_numbers<[1], [0], [0], [1], [0, 0, 1, 1], [], []>} : vector<2x2xf32>, vector<2x16xf32>, vector<2x16xf32> -> vector<2x16xf32>
    %10 = vector.shape_cast %6 : vector<2x16xf32> to vector<2x16x1xf32>
    %11 = vector.shape_cast %7 : vector<2x16xf32> to vector<2x16x1xf32>
    %12 = vector.shape_cast %8 : vector<2x16xf32> to vector<2x16x1xf32>
    %13 = vector.shape_cast %9 : vector<2x16xf32> to vector<2x16x1xf32>
    %c0_12 = arith.constant 0 : index
    %c0_13 = arith.constant 0 : index
    %c0_14 = arith.constant 0 : index
    %14 = vector.load %arg7[%c0_12, %c0_13, %c0_14] : memref<2x16x16xf32, #tpu.memory_space<vmem>>, vector<2x16x16xf32>
    %c0_15 = arith.constant 0 : index
    %c0_16 = arith.constant 0 : index
    %c0_17 = arith.constant 0 : index
    %15 = vector.load %arg8[%c0_15, %c0_16, %c0_17] : memref<2x16x16xf32, #tpu.memory_space<vmem>>, vector<2x16x16xf32>
    %c0_18 = arith.constant 0 : index
    %c0_19 = arith.constant 0 : index
    %c0_20 = arith.constant 0 : index
    %16 = vector.load %arg9[%c0_18, %c0_19, %c0_20] : memref<2x16x16xf32, #tpu.memory_space<vmem>>, vector<2x16x16xf32>
    %c0_21 = arith.constant 0 : index
    %c0_22 = arith.constant 0 : index
    %c0_23 = arith.constant 0 : index
    %17 = vector.load %arg10[%c0_21, %c0_22, %c0_23] : memref<2x16x16xf32, #tpu.memory_space<vmem>>, vector<2x16x16xf32>
    %c0_24 = arith.constant 0 : index
    %c0_25 = arith.constant 0 : index
    %c0_26 = arith.constant 0 : index
    %18 = vector.load %arg11[%c0_24, %c0_25, %c0_26] : memref<2x16x16xf32, #tpu.memory_space<vmem>>, vector<2x16x16xf32>
    %c0_27 = arith.constant 0 : index
    %c0_28 = arith.constant 0 : index
    %c0_29 = arith.constant 0 : index
    %19 = vector.load %arg12[%c0_27, %c0_28, %c0_29] : memref<2x16x16xf32, #tpu.memory_space<vmem>>, vector<2x16x16xf32>
    %20 = vector.broadcast %10 : vector<2x16x1xf32> to vector<2x16x16xf32>
    %21 = arith.mulf %20, %14 : vector<2x16x16xf32>
    %22 = vector.broadcast %11 : vector<2x16x1xf32> to vector<2x16x16xf32>
    %23 = arith.mulf %22, %15 : vector<2x16x16xf32>
    %24 = arith.subf %21, %23 : vector<2x16x16xf32>
    %25 = vector.broadcast %12 : vector<2x16x1xf32> to vector<2x16x16xf32>
    %26 = arith.mulf %25, %16 : vector<2x16x16xf32>
    %27 = arith.addf %24, %26 : vector<2x16x16xf32>
    %28 = vector.broadcast %13 : vector<2x16x1xf32> to vector<2x16x16xf32>
    %29 = arith.mulf %28, %17 : vector<2x16x16xf32>
    %30 = arith.subf %27, %29 : vector<2x16x16xf32>
    %cst_30 = arith.constant dense<0.000000e+00> : vector<2x16xf32>
    %31 = vector.multi_reduction <add>, %30, %cst_30 [1] : vector<2x16x16xf32> to vector<2x16xf32>
    %32 = vector.broadcast %10 : vector<2x16x1xf32> to vector<2x16x16xf32>
    %33 = arith.mulf %32, %15 : vector<2x16x16xf32>
    %34 = vector.broadcast %11 : vector<2x16x1xf32> to vector<2x16x16xf32>
    %35 = arith.mulf %34, %14 : vector<2x16x16xf32>
    %36 = arith.addf %33, %35 : vector<2x16x16xf32>
    %37 = vector.broadcast %12 : vector<2x16x1xf32> to vector<2x16x16xf32>
    %38 = arith.mulf %37, %17 : vector<2x16x16xf32>
    %39 = arith.addf %36, %38 : vector<2x16x16xf32>
    %40 = vector.broadcast %13 : vector<2x16x1xf32> to vector<2x16x16xf32>
    %41 = arith.mulf %40, %16 : vector<2x16x16xf32>
    %42 = arith.addf %39, %41 : vector<2x16x16xf32>
    %cst_31 = arith.constant dense<0.000000e+00> : vector<2x16xf32>
    %43 = vector.multi_reduction <add>, %42, %cst_31 [1] : vector<2x16x16xf32> to vector<2x16xf32>
    %44 = vector.broadcast %10 : vector<2x16x1xf32> to vector<2x16x16xf32>
    %45 = arith.mulf %44, %18 : vector<2x16x16xf32>
    %46 = vector.broadcast %11 : vector<2x16x1xf32> to vector<2x16x16xf32>
    %47 = arith.mulf %46, %19 : vector<2x16x16xf32>
    %48 = arith.subf %45, %47 : vector<2x16x16xf32>
    %cst_32 = arith.constant dense<0.000000e+00> : vector<2x16xf32>
    %49 = vector.multi_reduction <add>, %48, %cst_32 [1] : vector<2x16x16xf32> to vector<2x16xf32>
    %50 = vector.broadcast %10 : vector<2x16x1xf32> to vector<2x16x16xf32>
    %51 = arith.mulf %50, %19 : vector<2x16x16xf32>
    %52 = vector.broadcast %11 : vector<2x16x1xf32> to vector<2x16x16xf32>
    %53 = arith.mulf %52, %18 : vector<2x16x16xf32>
    %54 = arith.addf %51, %53 : vector<2x16x16xf32>
    %cst_33 = arith.constant dense<0.000000e+00> : vector<2x16xf32>
    %55 = vector.multi_reduction <add>, %54, %cst_33 [1] : vector<2x16x16xf32> to vector<2x16xf32>
    %c0_34 = arith.constant 0 : index
    %c0_35 = arith.constant 0 : index
    %56 = vector.load %arg5[%c0_34, %c0_35] : memref<2x2xf32, #tpu.memory_space<vmem>>, vector<2x2xf32>
    %c0_36 = arith.constant 0 : index
    %c0_37 = arith.constant 0 : index
    %57 = vector.load %arg6[%c0_36, %c0_37] : memref<2x2xf32, #tpu.memory_space<vmem>>, vector<2x2xf32>
    %cst_38 = arith.constant dense<0.000000e+00> : vector<2x16xf32>
    %58 = tpu.matmul %56, %31, %cst_38 {dimension_numbers = #tpu.dot_dimension_numbers<[1], [0], [0], [1], [0, 0, 1, 1], [], []>} : vector<2x2xf32>, vector<2x16xf32>, vector<2x16xf32> -> vector<2x16xf32>
    %cst_39 = arith.constant dense<0.000000e+00> : vector<2x16xf32>
    %59 = tpu.matmul %57, %43, %cst_39 {dimension_numbers = #tpu.dot_dimension_numbers<[1], [0], [0], [1], [0, 0, 1, 1], [], []>} : vector<2x2xf32>, vector<2x16xf32>, vector<2x16xf32> -> vector<2x16xf32>
    %60 = arith.addf %58, %59 : vector<2x16xf32>
    %c0_40 = arith.constant 0 : index
    %c0_41 = arith.constant 0 : index
    %c0_42 = arith.constant 0 : index
    %61 = vector.load %arg13[%c0_40, %c0_41, %c0_42] : memref<1x2x16xf32, #tpu.memory_space<vmem>>, vector<1x2x16xf32>
    %62 = vector.shape_cast %61 : vector<1x2x16xf32> to vector<2x16xf32>
    %63 = vector.shape_cast %60 : vector<2x16xf32> to vector<1x2x16xf32>
    tpu.vector_store %arg13[%c0_40, %c0_41, %c0_42], %63 {strides = array<i32>} : memref<1x2x16xf32, #tpu.memory_space<vmem>>, vector<1x2x16xf32>,
    %cst_43 = arith.constant dense<0.000000e+00> : vector<2x16xf32>
    %64 = tpu.matmul %56, %49, %cst_43 {dimension_numbers = #tpu.dot_dimension_numbers<[1], [0], [0], [1], [0, 0, 1, 1], [], []>} : vector<2x2xf32>, vector<2x16xf32>, vector<2x16xf32> -> vector<2x16xf32>
    %cst_44 = arith.constant dense<0.000000e+00> : vector<2x16xf32>
    %65 = tpu.matmul %57, %55, %cst_44 {dimension_numbers = #tpu.dot_dimension_numbers<[1], [0], [0], [1], [0, 0, 1, 1], [], []>} : vector<2x2xf32>, vector<2x16xf32>, vector<2x16xf32> -> vector<2x16xf32>
    %66 = arith.addf %64, %65 : vector<2x16xf32>
    %c0_45 = arith.constant 0 : index
    %c0_46 = arith.constant 0 : index
    %c0_47 = arith.constant 0 : index
    %67 = vector.load %arg14[%c0_45, %c0_46, %c0_47] : memref<1x2x16xf32, #tpu.memory_space<vmem>>, vector<1x2x16xf32>
    %68 = vector.shape_cast %67 : vector<1x2x16xf32> to vector<2x16xf32>
    %69 = vector.shape_cast %66 : vector<2x16xf32> to vector<1x2x16xf32>
    tpu.vector_store %arg14[%c0_45, %c0_46, %c0_47], %69 {strides = array<i32>} : memref<1x2x16xf32, #tpu.memory_space<vmem>>, vector<1x2x16xf32>,
    return
  }
  func.func @transform_0(%arg0: i32) -> (i32, i32, i32) {
    %c0_i32 = arith.constant 0 : i32
    %c0_i32_0 = arith.constant 0 : i32
    %c0_i32_1 = arith.constant 0 : i32
    return %arg0, %c0_i32, %c0_i32_0 : i32, i32, i32
  }
  func.func @transform_1(%arg0: i32) -> (i32, i32, i32) {
    %c0_i32 = arith.constant 0 : i32
    %c0_i32_0 = arith.constant 0 : i32
    %c0_i32_1 = arith.constant 0 : i32
    return %arg0, %c0_i32, %c0_i32_0 : i32, i32, i32
  }
  func.func @transform_2(%arg0: i32) -> (i32, i32) {
    %c0_i32 = arith.constant 0 : i32
    %c0_i32_0 = arith.constant 0 : i32
    %c0_i32_1 = arith.constant 0 : i32
    return %c0_i32, %c0_i32_0 : i32, i32
  }
  func.func @transform_3(%arg0: i32) -> (i32, i32) {
    %c0_i32 = arith.constant 0 : i32
    %c0_i32_0 = arith.constant 0 : i32
    %c0_i32_1 = arith.constant 0 : i32
    return %c0_i32, %c0_i32_0 : i32, i32
  }
  func.func @transform_4(%arg0: i32) -> (i32, i32) {
    %c0_i32 = arith.constant 0 : i32
    %c0_i32_0 = arith.constant 0 : i32
    %c0_i32_1 = arith.constant 0 : i32
    return %c0_i32, %c0_i32_0 : i32, i32
  }
  func.func @transform_5(%arg0: i32) -> (i32, i32) {
    %c0_i32 = arith.constant 0 : i32
    %c0_i32_0 = arith.constant 0 : i32
    %c0_i32_1 = arith.constant 0 : i32
    return %c0_i32, %c0_i32_0 : i32, i32
  }
  func.func @transform_6(%arg0: i32) -> (i32, i32, i32) {
    %c0_i32 = arith.constant 0 : i32
    %c0_i32_0 = arith.constant 0 : i32
    %c0_i32_1 = arith.constant 0 : i32
    %c0_i32_2 = arith.constant 0 : i32
    return %c0_i32, %c0_i32_0, %c0_i32_1 : i32, i32, i32
  }
  func.func @transform_7(%arg0: i32) -> (i32, i32, i32) {
    %c0_i32 = arith.constant 0 : i32
    %c0_i32_0 = arith.constant 0 : i32
    %c0_i32_1 = arith.constant 0 : i32
    %c0_i32_2 = arith.constant 0 : i32
    return %c0_i32, %c0_i32_0, %c0_i32_1 : i32, i32, i32
  }
  func.func @transform_8(%arg0: i32) -> (i32, i32, i32) {
    %c0_i32 = arith.constant 0 : i32
    %c0_i32_0 = arith.constant 0 : i32
    %c0_i32_1 = arith.constant 0 : i32
    %c0_i32_2 = arith.constant 0 : i32
    return %c0_i32, %c0_i32_0, %c0_i32_1 : i32, i32, i32
  }
  func.func @transform_9(%arg0: i32) -> (i32, i32, i32) {
    %c0_i32 = arith.constant 0 : i32
    %c0_i32_0 = arith.constant 0 : i32
    %c0_i32_1 = arith.constant 0 : i32
    %c0_i32_2 = arith.constant 0 : i32
    return %c0_i32, %c0_i32_0, %c0_i32_1 : i32, i32, i32
  }
  func.func @transform_10(%arg0: i32) -> (i32, i32, i32) {
    %c0_i32 = arith.constant 0 : i32
    %c0_i32_0 = arith.constant 0 : i32
    %c0_i32_1 = arith.constant 0 : i32
    %c0_i32_2 = arith.constant 0 : i32
    return %c0_i32, %c0_i32_0, %c0_i32_1 : i32, i32, i32
  }
  func.func @transform_11(%arg0: i32) -> (i32, i32, i32) {
    %c0_i32 = arith.constant 0 : i32
    %c0_i32_0 = arith.constant 0 : i32
    %c0_i32_1 = arith.constant 0 : i32
    %c0_i32_2 = arith.constant 0 : i32
    return %c0_i32, %c0_i32_0, %c0_i32_1 : i32, i32, i32
  }
  func.func @transform_12(%arg0: i32) -> (i32, i32, i32) {
    %c0_i32 = arith.constant 0 : i32
    %c0_i32_0 = arith.constant 0 : i32
    %c0_i32_1 = arith.constant 0 : i32
    return %arg0, %c0_i32, %c0_i32_0 : i32, i32, i32
  }
  func.func @transform_13(%arg0: i32) -> (i32, i32, i32) {
    %c0_i32 = arith.constant 0 : i32
    %c0_i32_0 = arith.constant 0 : i32
    %c0_i32_1 = arith.constant 0 : i32
    return %arg0, %c0_i32, %c0_i32_0 : i32, i32, i32
  }
}

module attributes {stable_mosaic.version = 11 : i64} {
  func.func @_mm_bias_kernel(%arg0: i32, %arg1: memref<2x16xf32, #tpu.memory_space<vmem>>, %arg2: memref<16x16xf32, #tpu.memory_space<vmem>>, %arg3: memref<1x16xf32, #tpu.memory_space<vmem>>, %arg4: memref<2x16xf32, #tpu.memory_space<vmem>>) attributes {dimension_semantics = [#tpu.dimension_semantics<parallel>], iteration_bounds = array<i64: 1>, scalar_prefetch = 0 : i64, scratch_operands = 0 : i64, tpu.core_type = #tpu.core_type<tc>, window_params = [{transform_indices = @transform_0, window_bounds = array<i64: 2, 16>}, {pipeline_mode = #tpu.pipeline_mode<synchronous>, transform_indices = @transform_1, window_bounds = array<i64: 16, 16>}, {pipeline_mode = #tpu.pipeline_mode<synchronous>, transform_indices = @transform_2, window_bounds = array<i64: 1, 16>}, {transform_indices = @transform_3, window_bounds = array<i64: 2, 16>}]} {
    %c0 = arith.constant 0 : index
    %c0_0 = arith.constant 0 : index
    %0 = vector.load %arg1[%c0, %c0_0] : memref<2x16xf32, #tpu.memory_space<vmem>>, vector<2x16xf32>
    %c0_1 = arith.constant 0 : index
    %c0_2 = arith.constant 0 : index
    %1 = vector.load %arg2[%c0_1, %c0_2] : memref<16x16xf32, #tpu.memory_space<vmem>>, vector<16x16xf32>
    %cst = arith.constant dense<0.000000e+00> : vector<2x16xf32>
    %2 = tpu.matmul %0, %1, %cst {dimension_numbers = #tpu.dot_dimension_numbers<[1], [0], [0], [1], [0, 0, 1, 1], [], []>} : vector<2x16xf32>, vector<16x16xf32>, vector<2x16xf32> -> vector<2x16xf32>
    %c0_3 = arith.constant 0 : index
    %c0_4 = arith.constant 0 : index
    %3 = vector.load %arg3[%c0_3, %c0_4] : memref<1x16xf32, #tpu.memory_space<vmem>>, vector<1x16xf32>
    %4 = vector.broadcast %3 : vector<1x16xf32> to vector<2x16xf32>
    %5 = arith.addf %2, %4 : vector<2x16xf32>
    %c0_5 = arith.constant 0 : index
    %c0_6 = arith.constant 0 : index
    %6 = vector.load %arg4[%c0_5, %c0_6] : memref<2x16xf32, #tpu.memory_space<vmem>>, vector<2x16xf32>
    tpu.vector_store %arg4[%c0_5, %c0_6], %5 {strides = array<i32>} : memref<2x16xf32, #tpu.memory_space<vmem>>, vector<2x16xf32>,
    return
  }
  func.func @transform_0(%arg0: i32) -> (i32, i32) {
    %c0_i32 = arith.constant 0 : i32
    %c0_i32_0 = arith.constant 0 : i32
    return %arg0, %c0_i32 : i32, i32
  }
  func.func @transform_1(%arg0: i32) -> (i32, i32) {
    %c0_i32 = arith.constant 0 : i32
    %c0_i32_0 = arith.constant 0 : i32
    %c0_i32_1 = arith.constant 0 : i32
    return %c0_i32, %c0_i32_0 : i32, i32
  }
  func.func @transform_2(%arg0: i32) -> (i32, i32) {
    %c0_i32 = arith.constant 0 : i32
    %c0_i32_0 = arith.constant 0 : i32
    %c0_i32_1 = arith.constant 0 : i32
    return %c0_i32, %c0_i32_0 : i32, i32
  }
  func.func @transform_3(%arg0: i32) -> (i32, i32) {
    %c0_i32 = arith.constant 0 : i32
    %c0_i32_0 = arith.constant 0 : i32
    return %arg0, %c0_i32 : i32, i32
  }
}

module attributes {stable_mosaic.version = 11 : i64} {
  func.func @_mm_bias_kernel(%arg0: i32, %arg1: memref<4x16xf32, #tpu.memory_space<vmem>>, %arg2: memref<16x16xf32, #tpu.memory_space<vmem>>, %arg3: memref<1x16xf32, #tpu.memory_space<vmem>>, %arg4: memref<4x16xf32, #tpu.memory_space<vmem>>) attributes {dimension_semantics = [#tpu.dimension_semantics<parallel>], iteration_bounds = array<i64: 1>, scalar_prefetch = 0 : i64, scratch_operands = 0 : i64, tpu.core_type = #tpu.core_type<tc>, window_params = [{transform_indices = @transform_0, window_bounds = array<i64: 4, 16>}, {pipeline_mode = #tpu.pipeline_mode<synchronous>, transform_indices = @transform_1, window_bounds = array<i64: 16, 16>}, {pipeline_mode = #tpu.pipeline_mode<synchronous>, transform_indices = @transform_2, window_bounds = array<i64: 1, 16>}, {transform_indices = @transform_3, window_bounds = array<i64: 4, 16>}]} {
    %c0 = arith.constant 0 : index
    %c0_0 = arith.constant 0 : index
    %0 = vector.load %arg1[%c0, %c0_0] : memref<4x16xf32, #tpu.memory_space<vmem>>, vector<4x16xf32>
    %c0_1 = arith.constant 0 : index
    %c0_2 = arith.constant 0 : index
    %1 = vector.load %arg2[%c0_1, %c0_2] : memref<16x16xf32, #tpu.memory_space<vmem>>, vector<16x16xf32>
    %cst = arith.constant dense<0.000000e+00> : vector<4x16xf32>
    %2 = tpu.matmul %0, %1, %cst {dimension_numbers = #tpu.dot_dimension_numbers<[1], [0], [0], [1], [0, 0, 1, 1], [], []>} : vector<4x16xf32>, vector<16x16xf32>, vector<4x16xf32> -> vector<4x16xf32>
    %c0_3 = arith.constant 0 : index
    %c0_4 = arith.constant 0 : index
    %3 = vector.load %arg3[%c0_3, %c0_4] : memref<1x16xf32, #tpu.memory_space<vmem>>, vector<1x16xf32>
    %4 = vector.broadcast %3 : vector<1x16xf32> to vector<4x16xf32>
    %5 = arith.addf %2, %4 : vector<4x16xf32>
    %c0_5 = arith.constant 0 : index
    %c0_6 = arith.constant 0 : index
    %6 = vector.load %arg4[%c0_5, %c0_6] : memref<4x16xf32, #tpu.memory_space<vmem>>, vector<4x16xf32>
    tpu.vector_store %arg4[%c0_5, %c0_6], %5 {strides = array<i32>} : memref<4x16xf32, #tpu.memory_space<vmem>>, vector<4x16xf32>,
    return
  }
  func.func @transform_0(%arg0: i32) -> (i32, i32) {
    %c0_i32 = arith.constant 0 : i32
    %c0_i32_0 = arith.constant 0 : i32
    return %arg0, %c0_i32 : i32, i32
  }
  func.func @transform_1(%arg0: i32) -> (i32, i32) {
    %c0_i32 = arith.constant 0 : i32
    %c0_i32_0 = arith.constant 0 : i32
    %c0_i32_1 = arith.constant 0 : i32
    return %c0_i32, %c0_i32_0 : i32, i32
  }
  func.func @transform_2(%arg0: i32) -> (i32, i32) {
    %c0_i32 = arith.constant 0 : i32
    %c0_i32_0 = arith.constant 0 : i32
    %c0_i32_1 = arith.constant 0 : i32
    return %c0_i32, %c0_i32_0 : i32, i32
  }
  func.func @transform_3(%arg0: i32) -> (i32, i32) {
    %c0_i32 = arith.constant 0 : i32
    %c0_i32_0 = arith.constant 0 : i32
    return %arg0, %c0_i32 : i32, i32
  }
}

module attributes {stable_mosaic.version = 11 : i64} {
  func.func @_mm_bias_kernel(%arg0: i32, %arg1: memref<16x16xf32, #tpu.memory_space<vmem>>, %arg2: memref<16x16xf32, #tpu.memory_space<vmem>>, %arg3: memref<1x16xf32, #tpu.memory_space<vmem>>, %arg4: memref<16x16xf32, #tpu.memory_space<vmem>>) attributes {dimension_semantics = [#tpu.dimension_semantics<parallel>], iteration_bounds = array<i64: 1>, scalar_prefetch = 0 : i64, scratch_operands = 0 : i64, tpu.core_type = #tpu.core_type<tc>, window_params = [{transform_indices = @transform_0, window_bounds = array<i64: 16, 16>}, {pipeline_mode = #tpu.pipeline_mode<synchronous>, transform_indices = @transform_1, window_bounds = array<i64: 16, 16>}, {pipeline_mode = #tpu.pipeline_mode<synchronous>, transform_indices = @transform_2, window_bounds = array<i64: 1, 16>}, {transform_indices = @transform_3, window_bounds = array<i64: 16, 16>}]} {
    %c0 = arith.constant 0 : index
    %c0_0 = arith.constant 0 : index
    %0 = vector.load %arg1[%c0, %c0_0] : memref<16x16xf32, #tpu.memory_space<vmem>>, vector<16x16xf32>
    %c0_1 = arith.constant 0 : index
    %c0_2 = arith.constant 0 : index
    %1 = vector.load %arg2[%c0_1, %c0_2] : memref<16x16xf32, #tpu.memory_space<vmem>>, vector<16x16xf32>
    %cst = arith.constant dense<0.000000e+00> : vector<16x16xf32>
    %2 = tpu.matmul %0, %1, %cst {dimension_numbers = #tpu.dot_dimension_numbers<[1], [0], [0], [1], [0, 0, 1, 1], [], []>} : vector<16x16xf32>, vector<16x16xf32>, vector<16x16xf32> -> vector<16x16xf32>
    %c0_3 = arith.constant 0 : index
    %c0_4 = arith.constant 0 : index
    %3 = vector.load %arg3[%c0_3, %c0_4] : memref<1x16xf32, #tpu.memory_space<vmem>>, vector<1x16xf32>
    %4 = vector.broadcast %3 : vector<1x16xf32> to vector<16x16xf32>
    %5 = arith.addf %2, %4 : vector<16x16xf32>
    %c0_5 = arith.constant 0 : index
    %c0_6 = arith.constant 0 : index
    %6 = vector.load %arg4[%c0_5, %c0_6] : memref<16x16xf32, #tpu.memory_space<vmem>>, vector<16x16xf32>
    tpu.vector_store %arg4[%c0_5, %c0_6], %5 {strides = array<i32>} : memref<16x16xf32, #tpu.memory_space<vmem>>, vector<16x16xf32>,
    return
  }
  func.func @transform_0(%arg0: i32) -> (i32, i32) {
    %c0_i32 = arith.constant 0 : i32
    %c0_i32_0 = arith.constant 0 : i32
    return %arg0, %c0_i32 : i32, i32
  }
  func.func @transform_1(%arg0: i32) -> (i32, i32) {
    %c0_i32 = arith.constant 0 : i32
    %c0_i32_0 = arith.constant 0 : i32
    %c0_i32_1 = arith.constant 0 : i32
    return %c0_i32, %c0_i32_0 : i32, i32
  }
  func.func @transform_2(%arg0: i32) -> (i32, i32) {
    %c0_i32 = arith.constant 0 : i32
    %c0_i32_0 = arith.constant 0 : i32
    %c0_i32_1 = arith.constant 0 : i32
    return %c0_i32, %c0_i32_0 : i32, i32
  }
  func.func @transform_3(%arg0: i32) -> (i32, i32) {
    %c0_i32 = arith.constant 0 : i32
    %c0_i32_0 = arith.constant 0 : i32
    return %arg0, %c0_i32 : i32, i32
  }
}

</mosaic_0001>

<bundles_post_ra>
// kernel: multiwavelet_cross_forward.31
= control target key start
LH: loop header
LB: loop body
LE: loop exit
PB: predicated region body
PF: predicated region fallthrough
CT: control target
= control target key end

     0   :  { %s549_s12 = smov 0   ;;  %s551_s13 = smov 0   ;;  %s592_s0 = inlined_call_operand.vmem [shape: f32[3,16,16], index: 0, kind: input, shape index: {}]   ;;  %s593_s1 = inlined_call_operand.vmem [shape: f32[3,16,16], index: 1, kind: input, shape index: {}]   ;;  %s594_s2 = inlined_call_operand.vmem [shape: f32[3,1,16], index: 2, kind: input, shape index: {}]   ;;  %s595_s3 = inlined_call_operand.vmem [shape: f32[3,16,16], index: 3, kind: output, shape index: {}]  }
   0x1   :  { %s553_s14 = smov 0  }
   0x2 LB: > { %s25_s15 = sadd.s32 1, %s523_s13  ;;  %p451_p0 = scmp.ge.s32.totalorder %s527_s14, 1  ;;  %s527_s14 = sphi %s553_s14, %s13_s14   ;;  %s523_s13 = sphi %s551_s13, %s597_s13   ;;  %s519_s12 = sphi %s549_s12, %s596_s12  }
   0x3   : > { %p27_p1 = scmp.ge.s32.totalorder %s25_s15, 3  ;;  %p176_p2 = scmp.lt.s32.totalorder %s527_s14, 4 }
   0x5   : > { %s599_s15 = smov (%p27_p1, %s25_s15), 0  ;;  %p177_p3 = pnand %p451_p0, %p176_p2 }
   0x6   : > { %p217_p4 = scmp.lt.s32.totalorder (!%p177_p3), %s519_s12, 2  ;;  %vm255_vm0 = vcmask (!%p177_p3), 130048  }
   0x7   : > { %180 = sbr.rel (%p177_p3) target bundleno = 240 (0xf0), region = 32 }
   0xe   : > { %s601_s12 = smov (!%p217_p4, %s519_s12), 2 }
   0xf   : > { %s463_s16 = sshll.u32 %s601_s12, 4  ;;  %s233_s25 = scalar_lea.vmem %s594_s2, %s601_s12 }
  0x10   : > { %s230_s19 = scalar_lea.vmem %s593_s1, %s463_s16  ;;  %s224_s22 = scalar_lea.vmem %s592_s0, %s463_s16  ;;  %v458_v5 = vld [vmem:[%s233_s25] ss:$0 sm:$0xff] }
  0x11   : > { %v246_v0 = vld [vmem:[%s230_s19] sm:$0xff]  ;;  %v247_v1 = vld [vmem:[%s230_s19 + $0x8] sm:$0xff]  ;;  %s242_s28 = scalar_lea.vmem %s595_s3, %s463_s16 }
  0x12   : > { %v244_v2 = vld [vmem:[%s224_s22] sm:$0xff]  ;;  %v477_v3 = vpack.c.bf16 %v247_v1, %v246_v0  ;;  %v245_v4 = vld [vmem:[%s224_s22 + $0x8] sm:$0xff] }
  0x13   : > { %474 = vmatprep.mubr.msk.f32.mxu0 %vm255_vm0, %v244_v2 }
  0x14   : > { %478 = vmatprep.subr.bf16.mxu0 %v477_v3 }
  0x15   : > { %480 = vmatpush3.bf16.msra.mxu0 %v477_v3 }
  0x18   : > { %475 = vmatmul.mubr.msk.f32.vlgmr.msra.gmra.mrb[0].mxu0 %vm255_vm0, %v245_v4 }
  0xeb   : > { %v476_v6 = vpop.f32.mrb[0].mxu0 }
  0xec   : > { %v334_v7 = vadd.f32 %v476_v6, %v458_v5  ;;  %v328_v8 = vpop.f32.mrb[1].mxu0 }
  0xed   : > { %v329_v9 = vadd.f32 %v458_v5, %v328_v8 }
  0xee   : > { %338 = vst.msk [vmem:[%s242_s28 + $0x8] sm:$0xff] %vm255_vm0, %v334_v7 }
  0xef   : > { %337 = vst.msk [vmem:[%s242_s28] sm:$0xff] %vm255_vm0, %v329_v9 }
  0xf0 PF: > { %s13_s14 = sadd.s32 1, %s527_s14   ;;  %s596_s12 = smov %s523_s13 }
  0xf1   : > { %p10_p5 = scmp.ge.s32.totalorder %s13_s14, 5   ;;  %s597_s13 = smov %s599_s15 }
  0xf3   :  { %12 = sbr.rel (!%p10_p5) target bundleno = 2 (0x2), region = 68 }

// kernel: multiwavelet_cross_forward.40
= control target key start
LH: loop header
LB: loop body
LE: loop exit
PB: predicated region body
PF: predicated region fallthrough
CT: control target
= control target key end

     0   :  { %v121_v0 = vmov 0.0|0.0   ;;  %vm122_vm0 = vmmov 0   ;;  %v123_v3 = vmov 0.0   ;;  %vm24_vm1 = vcmask 130048   ;;  %s159_s1 = inlined_call_operand.vmem [shape: f32[16,16], index: 1, kind: input, shape index: {}]   ;;  %s160_s0 = inlined_call_operand.vmem [shape: f32[8,16], index: 0, kind: input, shape index: {}]   ;;  %s161_s2 = inlined_call_operand.vmem [shape: f32[1,16], index: 2, kind: input, shape index: {}]   ;;  %s162_s3 = inlined_call_operand.vmem [shape: f32[8,16], index: 3, kind: output, shape index: {}]  }
   0x1   :  { %115 = vmatprep.subr.bf16.mxu0 %v121_v0  ;;  %v15_v1 = vld [vmem:[%s159_s1] sm:$0xff]  ;;  %v16_v2 = vld [vmem:[%s159_s1 + $0x8] sm:$0xff]  ;;  %112 = vmatprep.mubr.msk.f32.mxu0 %vm122_vm0, %v123_v3 }
   0x2   :  { %v116_v4 = vpack.c.bf16 %v16_v2, %v15_v1  ;;  %v14_v5 = vld [vmem:[%s160_s0] sm:$0xff] }
   0x3   :  { %v103_v6 = vld [vmem:[%s161_s2] ss:$0 sm:$0xff] }
   0x4   :  { %117 = vmatpush3.bf16.msra.mxu0 %v116_v4 }
   0x7   :  { %113 = vmatmul.mubr.msk.f32.vlgmr.msra.gmra.mrb[0].mxu0 %vm24_vm1, %v14_v5 }
  0xda   :  { %v94_v7 = vpop.f32.mrb[0].mxu0 }
  0xdb   :  { %v95_v8 = vadd.f32 %v103_v6, %v94_v7  ;;  %v114_v9 = vpop.f32.mrb[1].mxu0 }
  0xdd   :  { %98 = vst.msk [vmem:[%s162_s3] sm:$0xff] %vm24_vm1, %v95_v8 }

// kernel: multiwavelet_cross_forward.42
= control target key start
LH: loop header
LB: loop body
LE: loop exit
PB: predicated region body
PF: predicated region fallthrough
CT: control target
= control target key end

     0   :  { %s1459_s16 = smov 0   ;;  %s1572_s0 = inlined_call_operand.vmem [shape: f32[2,1,16], index: 0, kind: input, shape index: {}]   ;;  %s1573_s1 = inlined_call_operand.vmem [shape: f32[2,1,16], index: 1, kind: input, shape index: {}]   ;;  %s1574_s2 = inlined_call_operand.<no memory space> [shape: f32[1,1], index: 2, kind: input, shape index: {}, may-alias: {2,4}]   ;;  %s1575_s6 = inlined_call_operand.vmem [shape: f32[1,16,16], index: 6, kind: input, shape index: {}]   ;;  %s1576_s7 = inlined_call_operand.vmem [shape: f32[1,16,16], index: 7, kind: input, shape index: {}]   ;;  %s1577_s8 = inlined_call_operand.vmem [shape: f32[1,16,16], index: 8, kind: input, shape index: {}]   ;;  %s1578_s9 = inlined_call_operand.vmem [shape: f32[1,16,16], index: 9, kind: input, shape index: {}]   ;;  %s1579_s10 = inlined_call_operand.vmem [shape: f32[1,16,16], index: 10, kind: input, shape index: {}]   ;;  %s1580_s11 = inlined_call_operand.vmem [shape: f32[1,16,16], index: 11, kind: input, shape index: {}]   ;;  %s1581_s12 = inlined_call_operand.vmem [shape: f32[2,1,16], index: 12, kind: output, shape index: {0}]   ;;  %s1582_s13 = inlined_call_operand.vmem [shape: f32[2,1,16], index: 13, kind: output, shape index: {1}]   ;;  %s1583_s3 = inlined_call_operand.<no memory space> [shape: f32[1,1], index: 3, kind: input, shape index: {}, may-alias: {3,5}]   ;;  %s1584_s4 = inlined_call_operand.<no memory space> [shape: f32[1,1], index: 4, kind: input, shape index: {}, may-alias: {2,4}]   ;;  %s1585_s5 = inlined_call_operand.<no memory space> [shape: f32[1,1], index: 5, kind: input, shape index: {}, may-alias: {3,5}]  }
   0x1   :  { %v19_v0 = vstv %s1574_s2  ;;  %v21_v1 = vstv %s1583_s3  ;;  %v23_v2 = vstv %s1584_s4  ;;  %v25_v3 = vstv %s1585_s5 }
   0x2   :  { %20 = vst [vmem:[#allocation2] sm:$0x1] %v19_v0  ;;  %22 = vst [vmem:[#allocation3] sm:$0x1] %v21_v1 }
   0x3   :  { %24 = vst [vmem:[#allocation4] sm:$0x1] %v23_v2  ;;  %26 = vst [vmem:[#allocation5] sm:$0x1] %v25_v3 }
   0x4 LB: > { %s1274_s2 = sadd.s32 4294967295, %s1373_s16   ;;  %p1278_p0 = scmp.ge.s32.totalorder %s1373_s16, 1  ;;  %s1373_s16 = sphi %s1459_s16, %s32_s16  }
   0x5   : > { %p404_p1 = scmp.lt.s32.totalorder %s1373_s16, 3 }
   0x7   : > { %p405_p2 = pnand %p1278_p0, %p404_p1 }
   0x8   : > { %p450_p3 = scmp.lt.s32.totalorder (!%p405_p2), %s1274_s2, 1  ;;  %v1375_v4 = vmov (!%p405_p2), 0.0   ;;  %vm1376_vm0 = vmmov (!%p405_p2), 0   ;;  %vm470_vm1 = vcmask (!%p405_p2), 1040384   ;;  %vm466_vm2 = vcmask (!%p405_p2), 7168   ;;  %v812_v24 = vld [vmem:[%s1579_s10] sm:$0xff] (!%p405_p2) }
   0x9   : > { %408 = sbr.rel (%p405_p2) target bundleno = 602 (0x25a), region = 68  ;;  %1313 = vmatprep.subr.mxu0 (!%p405_p2), %v1375_v4  ;;  %1318 = vmatprep.subr.mxu1 (!%p405_p2), %v1375_v4  ;;  %v464_v5 = vld [vmem:[#allocation2] sm:$0x1] (!%p405_p2)  ;;  %v465_v6 = vld [vmem:[#allocation3] sm:$0x1] (!%p405_p2)  ;;  %v760_v9 = vlaneseq (!%p405_p2)  ;;  %v805_v30 = vld [vmem:[%s1575_s6 + $0x8] sm:$0xff] (!%p405_p2) }
   0xa   : > { %1315 = vmatprep.mubr.msk.f32.mxu0 (!%p405_p2), %vm1376_vm0, %v1375_v4  ;;  %1320 = vmatprep.mubr.msk.f32.mxu1 (!%p405_p2), %vm1376_vm0, %v1375_v4  ;;  %v814_v25 = vld [vmem:[%s1580_s11] sm:$0xff] (!%p405_p2)  ;;  %v807_v35 = vld [vmem:[%s1576_s7 + $0x8] sm:$0xff] (!%p405_p2)  ;;  %vm830_vm3 = vcmask (!%p405_p2), 130048   ;;  %vm1047_vm4 = vcmask (!%p405_p2), 122880  }
   0xb   : > { %v761_v10 = vshrl.u32 (!%p405_p2), %v760_v9, 7  ;;  %v804_v28 = vld [vmem:[%s1575_s6] sm:$0xff] (!%p405_p2)  ;;  %v813_v36 = vld [vmem:[%s1579_s10 + $0x8] sm:$0xff] (!%p405_p2) }
   0xc   : > { %v806_v29 = vld [vmem:[%s1576_s7] sm:$0xff] (!%p405_p2)  ;;  %v815_v37 = vld [vmem:[%s1580_s11 + $0x8] sm:$0xff] (!%p405_p2) }
   0xd   : > { %v762_v11 = vsub.s32 (!%p405_p2), 0, %v761_v10  ;;  %v809_v52 = vld [vmem:[%s1577_s8 + $0x8] sm:$0xff] (!%p405_p2)  ;;  %v808_v56 = vld [vmem:[%s1577_s8] sm:$0xff] (!%p405_p2) }
   0xe   : > { %v811_v53 = vld [vmem:[%s1578_s9 + $0x8] sm:$0xff] (!%p405_p2)  ;;  %v810_v57 = vld [vmem:[%s1578_s9] sm:$0xff] (!%p405_p2) }
  0x10   : > { %s1587_s2 = smov (!%p450_p3, %s1274_s2), 1 }
  0x11   : > { %s452_s5 = scalar_lea.vmem %s1572_s0, %s1587_s2  ;;  %s455_s19 = scalar_lea.vmem %s1573_s1, %s1587_s2 }
  0x12   : > { %v462_v7 = vld [vmem:[%s452_s5] sm:$0x1]  ;;  %s461_s27 = scalar_lea.vmem %s1582_s13, %s1587_s2  ;;  %s458_s30 = scalar_lea.vmem %s1581_s12, %s1587_s2 }
  0x13   : > { %1314 = vmatpush3.msk.msra.mxu0 %vm470_vm1, %v462_v7  ;;  %1319 = vmatpush3.msk.msra.mxu1 %vm470_vm1, %v462_v7  ;;  %v463_v8 = vld [vmem:[%s455_s19] sm:$0x1] }
  0x14   : > { %1316 = vmatmul.mubr.msk.f32.vlgmr.msra.gmra.mrb[0].mxu0 %vm466_vm2, %v464_v5  ;;  %1321 = vmatmul.mubr.msk.f32.vlgmr.msra.gmra.mrb[0].mxu1 %vm466_vm2, %v465_v6 }
  0x15   : > { %1323 = vmatprep.subr.mxu0 %v1375_v4  ;;  %1325 = vmatprep.mubr.msk.f32.mxu0 %vm1376_vm0, %v1375_v4 }
  0x16   : > { %1324 = vmatpush3.msk.msra.mxu0 %vm470_vm1, %v463_v8  ;;  %1328 = vmatprep.subr.mxu1 %v1375_v4 }
  0x17   : > { %1329 = vmatpush3.msk.msra.mxu1 %vm470_vm1, %v463_v8  ;;  %1330 = vmatprep.mubr.msk.f32.mxu1 %vm1376_vm0, %v1375_v4 }
  0x18   : > { %1326 = vmatmul.mubr.msk.f32.vlgmr.msra.gmra.mrb[2].mxu0 %vm466_vm2, %v464_v5  ;;  %1331 = vmatmul.mubr.msk.f32.vlgmr.msra.gmra.mrb[2].mxu1 %vm466_vm2, %v465_v6 }
  0x19   : > { %1343 = vmatprep.subr.mxu1 %v1375_v4  ;;  %1345 = vmatprep.mubr.msk.f32.mxu1 %vm1376_vm0, %v1375_v4 }
  0x1a   : > { %1333 = vmatprep.subr.mxu0 %v1375_v4  ;;  %1335 = vmatprep.mubr.msk.f32.mxu0 %vm1376_vm0, %v1375_v4 }
  0xe7   : > { %v540_v12 = vpop.f32.mrb[0].mxu0  ;;  %v613_v13 = vpop.f32.mrb[0].mxu1 }
  0xe8   : > { %v763_v14 = vrot.slane %v540_v12, %v762_v11  ;;  %v774_v15 = vrot.slane %v613_v13, %v762_v11  ;;  %v1317_v16 = vpop.f32.mrb[1].mxu0  ;;  %v1322_v17 = vpop.f32.mrb[1].mxu1 }
  0xea   : > { %776 = vbcast.lane.b32.xlu1 %v774_v15, 256  ;;  %765 = vbcast.lane.b32.xlu0 %v763_v14, 256 }
  0xeb   : > { %v686_v18 = vpop.f32.mrb[2].mxu0  ;;  %v756_v19 = vpop.f32.mrb[2].mxu1 }
  0xec   : > { %v1327_v20 = vpop.f32.mrb[3].mxu0  ;;  %v1332_v21 = vpop.f32.mrb[3].mxu1  ;;  %v785_v22 = vrot.slane %v686_v18, %v762_v11  ;;  %v796_v23 = vrot.slane %v756_v19, %v762_v11 }
  0xee   : > { %780 = vbcast.lane.b32.xlu1 %v774_v15, 264  ;;  %769 = vbcast.lane.b32.xlu0 %v763_v14, 264 }
  0xf2   : > { %791 = vbcast.lane.b32.xlu1 %v785_v22, 264  ;;  %787 = vbcast.lane.b32.xlu0 %v785_v22, 256 }
  0xf6   : > { %802 = vbcast.lane.b32.xlu1 %v796_v23, 264  ;;  %798 = vbcast.lane.b32.xlu0 %v796_v23, 256 }
 0x15c   : > { %v777_v26 = vpop.permute.xlu1 %776  ;;  %v766_v27 = vpop.permute.xlu0 %765 }
 0x15d   : > { %v865_v31 = vmul.f32 %v814_v25, %v777_v26  ;;  %v880_v32 = vmul.f32 %v812_v24, %v777_v26  ;;  %v863_v33 = vmul.f32 %v812_v24, %v766_v27  ;;  %v878_v34 = vmul.f32 %v814_v25, %v766_v27 }
 0x15e   : > { %v818_v38 = vmul.f32 %v806_v29, %v777_v26  ;;  %v842_v39 = vmul.f32 %v804_v28, %v777_v26  ;;  %v816_v40 = vmul.f32 %v804_v28, %v766_v27  ;;  %v840_v41 = vmul.f32 %v806_v29, %v766_v27 }
 0x15f   : > { %v867_v48 = vsub.f32 %v863_v33, %v865_v31  ;;  %v882_v49 = vadd.f32 %v880_v32, %v878_v34 }
 0x160   : > { %v781_v42 = vpop.permute.xlu1 %780  ;;  %v770_v43 = vpop.permute.xlu0 %769  ;;  %v820_v62 = vsub.f32 %v816_v40, %v818_v38  ;;  %v844_v63 = vadd.f32 %v842_v39, %v840_v41 }
 0x161   : > { %v819_v44 = vmul.f32 %v807_v35, %v781_v42  ;;  %v843_v45 = vmul.f32 %v805_v30, %v781_v42  ;;  %v866_v46 = vmul.f32 %v815_v37, %v781_v42  ;;  %v881_v47 = vmul.f32 %v813_v36, %v781_v42 }
 0x162   : > { %v817_v50 = vmul.f32 %v805_v30, %v770_v43  ;;  %v841_v51 = vmul.f32 %v807_v35, %v770_v43  ;;  %v864_v54 = vmul.f32 %v813_v36, %v770_v43  ;;  %v879_v55 = vmul.f32 %v815_v37, %v770_v43 }
 0x163   : > { %v869_v5 = vsel %vm830_vm3, %v867_v48, 0.0  ;;  %v884_v6 = vsel %vm830_vm3, %v882_v49, 0.0 }
 0x164   : > { %v792_v58 = vpop.permute.xlu1 %791  ;;  %v788_v59 = vpop.permute.xlu0 %787  ;;  %v821_v60 = vsub.f32 %v817_v50, %v819_v44  ;;  %v845_v61 = vadd.f32 %v843_v45, %v841_v51  ;;  %v868_v0 = vsub.f32 %v864_v54, %v866_v46  ;;  %v883_v1 = vadd.f32 %v881_v47, %v879_v55  ;;  %v894_v50 = vld [vmem:[#allocation5] sm:$0x1] }
 0x165   : > { %v823_v2 = vmul.f32 %v809_v52, %v792_v58  ;;  %v847_v3 = vmul.f32 %v811_v53, %v792_v58  ;;  %v822_v7 = vmul.f32 %v808_v56, %v788_v59  ;;  %v846_v8 = vmul.f32 %v810_v57, %v788_v59  ;;  %v893_v58 = vld [vmem:[#allocation4] sm:$0x1] }
 0x166   : > { %v870_v9 = vsel %vm830_vm3, %v868_v0, 0.0  ;;  %v885_v10 = vsel %vm830_vm3, %v883_v1, 0.0 }
 0x167   : > { %v825_v11 = vadd.f32 %v823_v2, %v821_v60  ;;  %v849_v12 = vadd.f32 %v847_v3, %v845_v61  ;;  %v871_v13 = vadd.f32 %v870_v9, %v869_v5  ;;  %v886_v14 = vadd.f32 %v885_v10, %v884_v6 }
 0x168   : > { %v803_v15 = vpop.permute.xlu1 %802  ;;  %v824_v16 = vadd.f32 %v822_v7, %v820_v62  ;;  %v848_v17 = vadd.f32 %v846_v8, %v844_v63  ;;  %v799_v18 = vpop.permute.xlu0 %798 }
 0x169   : > { %v827_v19 = vmul.f32 %v811_v53, %v803_v15  ;;  %v851_v20 = vmul.f32 %v809_v52, %v803_v15  ;;  %v826_v21 = vmul.f32 %v810_v57, %v799_v18  ;;  %v850_v22 = vmul.f32 %v808_v56, %v799_v18 }
 0x16a   : > { %v872_v23 = vrot.slane %v871_v13, 4  ;;  %v887_v24 = vrot.slane %v886_v14, 4 }
 0x16b   : > { %v829_v25 = vsub.f32 %v825_v11, %v827_v19  ;;  %v853_v26 = vadd.f32 %v851_v20, %v849_v12  ;;  %v828_v27 = vsub.f32 %v824_v16, %v826_v21  ;;  %v852_v28 = vadd.f32 %v850_v22, %v848_v17 }
 0x16c   : > { %v873_v29 = vadd.f32 %v872_v23, %v871_v13  ;;  %v888_v30 = vadd.f32 %v887_v24, %v886_v14 }
 0x16d   : > { %v832_v31 = vsel %vm830_vm3, %v829_v25, 0.0  ;;  %v855_v32 = vsel %vm830_vm3, %v853_v26, 0.0  ;;  %v831_v33 = vsel %vm830_vm3, %v828_v27, 0.0  ;;  %v854_v34 = vsel %vm830_vm3, %v852_v28, 0.0 }
 0x16e   : > { %v874_v35 = vrot.slane %v873_v29, 2  ;;  %v889_v36 = vrot.slane %v888_v30, 2  ;;  %v833_v37 = vadd.f32 %v832_v31, %v831_v33  ;;  %v856_v38 = vadd.f32 %v855_v32, %v854_v34 }
 0x170   : > { %v834_v39 = vrot.slane %v833_v37, 4  ;;  %v857_v40 = vrot.slane %v856_v38, 4  ;;  %v890_v41 = vadd.f32 %v889_v36, %v888_v30  ;;  %v875_v42 = vadd.f32 %v874_v35, %v873_v29 }
 0x172   : > { %v835_v43 = vadd.f32 %v834_v39, %v833_v37  ;;  %v858_v44 = vadd.f32 %v857_v40, %v856_v38  ;;  %v891_v45 = vrot.slane %v890_v41, 1  ;;  %v876_v46 = vrot.slane %v875_v42, 1 }
 0x174   : > { %v836_v47 = vrot.slane %v835_v43, 2  ;;  %v859_v48 = vrot.slane %v858_v44, 2  ;;  %v892_v49 = vadd.f32 %v891_v45, %v890_v41  ;;  %v877_v53 = vadd.f32 %v876_v46, %v875_v42 }
 0x176   : > { %v837_v51 = vadd.f32 %v836_v47, %v835_v43  ;;  %v860_v52 = vadd.f32 %v859_v48, %v858_v44  ;;  %1344 = vmatpush3.msk.msra.mxu1 %vm470_vm1, %v892_v49 }
 0x177   : > { %1348 = vmatprep.subr.mxu1 %v1375_v4  ;;  %1346 = vmatmul.mubr.msk.f32.vlgmr.msra.gmra.mrb[4].mxu1 %vm466_vm2, %v894_v50 }
 0x178   : > { %v838_v54 = vrot.slane %v837_v51, 1  ;;  %v861_v55 = vrot.slane %v860_v52, 1  ;;  %1349 = vmatpush3.msk.msra.mxu1 %vm470_vm1, %v877_v53  ;;  %1350 = vmatprep.mubr.msk.f32.mxu1 %vm1376_vm0, %v1375_v4 }
 0x17a   : > { %v862_v56 = vadd.f32 %v861_v55, %v860_v52  ;;  %v839_v57 = vadd.f32 %v838_v54, %v837_v51 }
 0x17c   : > { %1334 = vmatpush3.msk.msra.mxu0 %vm470_vm1, %v862_v56 }
 0x17d   : > { %1336 = vmatmul.mubr.msk.f32.vlgmr.msra.gmra.mrb[4].mxu0 %vm466_vm2, %v894_v50  ;;  %1338 = vmatprep.subr.mxu0 %v1375_v4 }
 0x17e   : > { %1339 = vmatpush3.msk.msra.mxu0 %vm470_vm1, %v839_v57  ;;  %1340 = vmatprep.mubr.msk.f32.mxu0 %vm1376_vm0, %v1375_v4 }
 0x17f   : > { %1351 = vmatmul.mubr.msk.f32.vlgmr.msra.gmra.mrb[4].mxu1 %vm466_vm2, %v893_v58 }
 0x185   : > { %1341 = vmatmul.mubr.msk.f32.vlgmr.msra.gmra.mrb[4].mxu0 %vm466_vm2, %v893_v58 }
 0x252   : > { %v1191_v59 = vpop.f32.mrb[4].mxu1 }
 0x253   : > { %1195 = vst.msk [vmem:[%s461_s27] sm:$0x1] %vm1047_vm4, %v1191_v59  ;;  %v1352_v60 = vpop.f32.mrb[5].mxu1 }
 0x258   : > { %v1043_v61 = vpop.f32.mrb[4].mxu0 }
 0x259   : > { %1048 = vst.msk [vmem:[%s458_s30] sm:$0x1] %vm1047_vm4, %v1043_v61  ;;  %v1342_v62 = vpop.f32.mrb[5].mxu0 }
 0x25a PF: > { %s32_s16 = sadd.s32 1, %s1373_s16  }
 0x25b   : > { %p29_p4 = scmp.ge.s32.totalorder %s32_s16, 4  }
 0x25d   :  { %31 = sbr.rel (!%p29_p4) target bundleno = 4 (0x4), region = 113 }

// kernel: multiwavelet_cross_forward.53
= control target key start
LH: loop header
LB: loop body
LE: loop exit
PB: predicated region body
PF: predicated region fallthrough
CT: control target
= control target key end

     0   :  { %v122_v0 = vmov 0.0|0.0   ;;  %vm123_vm0 = vmmov 0   ;;  %v124_v3 = vmov 0.0   ;;  %vm24_vm1 = vcmask 130048   ;;  %s160_s1 = inlined_call_operand.vmem [shape: f32[16,16], index: 1, kind: input, shape index: {}]   ;;  %s161_s0 = inlined_call_operand.vmem [shape: f32[2,16], index: 0, kind: input, shape index: {}]   ;;  %s162_s2 = inlined_call_operand.vmem [shape: f32[1,16], index: 2, kind: input, shape index: {}]   ;;  %s163_s3 = inlined_call_operand.vmem [shape: f32[2,16], index: 3, kind: output, shape index: {}]  }
   0x1   :  { %116 = vmatprep.subr.bf16.mxu0 %v122_v0  ;;  %v15_v1 = vld [vmem:[%s160_s1] sm:$0xff]  ;;  %v16_v2 = vld [vmem:[%s160_s1 + $0x8] sm:$0xff]  ;;  %113 = vmatprep.mubr.msk.f32.mxu0 %vm123_vm0, %v124_v3  ;;  %vm98_vm2 = vcmask 123904  }
   0x2   :  { %v117_v4 = vpack.c.bf16 %v16_v2, %v15_v1  ;;  %v14_v5 = vld [vmem:[%s161_s0] sm:$0x3] }
   0x3   :  { %v104_v6 = vld [vmem:[%s162_s2] ss:$0 sm:$0xff] }
   0x4   :  { %118 = vmatpush3.bf16.msra.mxu0 %v117_v4 }
   0x7   :  { %114 = vmatmul.mubr.msk.f32.vlgmr.msra.gmra.mrb[0].mxu0 %vm24_vm1, %v14_v5 }
  0xda   :  { %v94_v7 = vpop.f32.mrb[0].mxu0 }
  0xdb   :  { %v95_v8 = vadd.f32 %v104_v6, %v94_v7  ;;  %v115_v9 = vpop.f32.mrb[1].mxu0 }
  0xdd   :  { %99 = vst.msk [vmem:[%s163_s3] sm:$0x3] %vm98_vm2, %v95_v8 }

// kernel: multiwavelet_cross_forward.41
= control target key start
LH: loop header
LB: loop body
LE: loop exit
PB: predicated region body
PF: predicated region fallthrough
CT: control target
= control target key end

     0   :  { %s1612_s25 = smov 0   ;;  %s1833_s0 = inlined_call_operand.vmem [shape: f32[2,2,16], index: 0, kind: input, shape index: {}]   ;;  %s1834_s1 = inlined_call_operand.vmem [shape: f32[2,2,16], index: 1, kind: input, shape index: {}]   ;;  %s1835_s2 = inlined_call_operand.vmem [shape: f32[2,2], index: 2, kind: input, shape index: {}]   ;;  %s1836_s3 = inlined_call_operand.vmem [shape: f32[2,2], index: 3, kind: input, shape index: {}]   ;;  %s1837_s4 = inlined_call_operand.vmem [shape: f32[2,2], index: 4, kind: input, shape index: {}]   ;;  %s1838_s5 = inlined_call_operand.vmem [shape: f32[2,2], index: 5, kind: input, shape index: {}]   ;;  %s1839_s6 = inlined_call_operand.vmem [shape: f32[2,16,16], index: 6, kind: input, shape index: {}]   ;;  %s1840_s7 = inlined_call_operand.vmem [shape: f32[2,16,16], index: 7, kind: input, shape index: {}]   ;;  %s1841_s8 = inlined_call_operand.vmem [shape: f32[2,16,16], index: 8, kind: input, shape index: {}]   ;;  %s1842_s9 = inlined_call_operand.vmem [shape: f32[2,16,16], index: 9, kind: input, shape index: {}]   ;;  %s1843_s10 = inlined_call_operand.vmem [shape: f32[2,16,16], index: 10, kind: input, shape index: {}]   ;;  %s1844_s11 = inlined_call_operand.vmem [shape: f32[2,16,16], index: 11, kind: input, shape index: {}]   ;;  %s1845_s12 = inlined_call_operand.vmem [shape: f32[2,2,16], index: 12, kind: output, shape index: {0}]   ;;  %s1846_s13 = inlined_call_operand.vmem [shape: f32[2,2,16], index: 13, kind: output, shape index: {1}]  }
   0x1 LB: > { %s1435_s26 = sadd.s32 4294967295, %s1538_s25   ;;  %p1439_p0 = scmp.ge.s32.totalorder %s1538_s25, 1  ;;  %s1538_s25 = sphi %s1612_s25, %s24_s25  }
   0x2   : > { %p398_p1 = scmp.lt.s32.totalorder %s1538_s25, 3 }
   0x4   : > { %p399_p2 = pnand %p1439_p0, %p398_p1 }
   0x5   : > { %p448_p3 = scmp.lt.s32.totalorder (!%p399_p2), %s1435_s26, 1  ;;  %v1540_v0 = vmov (!%p399_p2), 0.0   ;;  %vm1541_vm0 = vmmov (!%p399_p2), 0   ;;  %vm472_vm1 = vcmask (!%p399_p2), 1041408   ;;  %v466_v1 = vld [vmem:[%s1835_s2] sm:$0x3] (!%p399_p2)  ;;  %v762_v5 = vlaneseq (!%p399_p2) }
   0x6   : > { %402 = sbr.rel (%p399_p2) target bundleno = 618 (0x26a), region = 68  ;;  %1478 = vmatprep.subr.mxu0 (!%p399_p2), %v1540_v0  ;;  %1480 = vmatprep.mubr.msk.f32.mxu0 (!%p399_p2), %vm1541_vm0, %v1540_v0  ;;  %vm468_vm2 = vcmask (!%p399_p2), 15360   ;;  %v467_v2 = vld [vmem:[%s1836_s3] sm:$0x3] (!%p399_p2)  ;;  %v1665_v25 = vld [vmem:[%s1839_s6 + $0x10] sm:$0xff] (!%p399_p2)  ;;  %v853_v35 = vld [vmem:[%s1839_s6 + $0x18] sm:$0xff] (!%p399_p2) }
   0x7   : > { %1483 = vmatprep.subr.mxu1 (!%p399_p2), %v1540_v0  ;;  %1485 = vmatprep.mubr.msk.f32.mxu1 (!%p399_p2), %vm1541_vm0, %v1540_v0  ;;  %v763_v6 = vshrl.u32 (!%p399_p2), %v762_v5, 7  ;;  %v1670_v28 = vld [vmem:[%s1840_s7 + $0x10] sm:$0xff] (!%p399_p2)  ;;  %v850_v31 = vld [vmem:[%s1839_s6] sm:$0xff] (!%p399_p2)  ;;  %v857_v36 = vld [vmem:[%s1840_s7 + $0x18] sm:$0xff] (!%p399_p2)  ;;  %vm902_vm3 = vcmask (!%p399_p2), 130048   ;;  %vm1031_vm4 = vcmask (!%p399_p2), 1041409  }
   0x8   : > { %v1675_v29 = vld [vmem:[%s1843_s10 + $0x10] sm:$0xff] (!%p399_p2)  ;;  %v854_v32 = vld [vmem:[%s1840_s7] sm:$0xff] (!%p399_p2)  ;;  %v869_v37 = vld [vmem:[%s1843_s10 + $0x18] sm:$0xff] (!%p399_p2)  ;;  %vm1186_vm5 = vcmask (!%p399_p2), 123904  }
   0x9   : > { %v775_v7 = vsub.s32 (!%p399_p2), 1, %v763_v6  ;;  %v764_v8 = vsub.s32 (!%p399_p2), 0, %v763_v6  ;;  %v1680_v30 = vld [vmem:[%s1844_s11 + $0x10] sm:$0xff] (!%p399_p2)  ;;  %v866_v33 = vld [vmem:[%s1843_s10] sm:$0xff] (!%p399_p2)  ;;  %v873_v38 = vld [vmem:[%s1844_s11 + $0x18] sm:$0xff] (!%p399_p2) }
   0xa   : > { %v870_v34 = vld [vmem:[%s1844_s11] sm:$0xff] (!%p399_p2)  ;;  %v851_v40 = vld [vmem:[%s1839_s6 + $0x8] sm:$0xff] (!%p399_p2) }
   0xb   : > { %v855_v46 = vld [vmem:[%s1840_s7 + $0x8] sm:$0xff] (!%p399_p2) }
   0xc   : > { %v867_v47 = vld [vmem:[%s1843_s10 + $0x8] sm:$0xff] (!%p399_p2) }
   0xd   : > { %s1848_s26 = smov (!%p448_p3, %s1435_s26), 1  ;;  %v871_v48 = vld [vmem:[%s1844_s11 + $0x8] sm:$0xff] }
   0xe   : > { %s1626_s27 = sshll.u32 %s1848_s26, 1 }
   0xf   : > { %s451_s30 = scalar_lea.vmem %s1833_s0, %s1626_s27  ;;  %s455_s20 = scalar_lea.vmem %s1834_s1, %s1626_s27 }
  0x10   : > { %v464_v3 = vld [vmem:[%s451_s30] sm:$0x3]  ;;  %s463_s15 = scalar_lea.vmem %s1846_s13, %s1626_s27  ;;  %s459_s18 = scalar_lea.vmem %s1845_s12, %s1626_s27 }
  0x11   : > { %1479 = vmatpush3.msk.msra.mxu0 %vm472_vm1, %v464_v3  ;;  %1484 = vmatpush3.msk.msra.mxu1 %vm472_vm1, %v464_v3  ;;  %v465_v4 = vld [vmem:[%s455_s20] sm:$0x3] }
  0x12   : > { %1481 = vmatmul.mubr.msk.f32.vlgmr.msra.gmra.mrb[0].mxu0 %vm468_vm2, %v466_v1  ;;  %1486 = vmatmul.mubr.msk.f32.vlgmr.msra.gmra.mrb[0].mxu1 %vm468_vm2, %v467_v2 }
  0x13   : > { %1488 = vmatprep.subr.mxu0 %v1540_v0  ;;  %1490 = vmatprep.mubr.msk.f32.mxu0 %vm1541_vm0, %v1540_v0 }
  0x14   : > { %1489 = vmatpush3.msk.msra.mxu0 %vm472_vm1, %v465_v4  ;;  %1493 = vmatprep.subr.mxu1 %v1540_v0 }
  0x15   : > { %1494 = vmatpush3.msk.msra.mxu1 %vm472_vm1, %v465_v4  ;;  %1495 = vmatprep.mubr.msk.f32.mxu1 %vm1541_vm0, %v1540_v0 }
  0x16   : > { %1491 = vmatmul.mubr.msk.f32.vlgmr.msra.gmra.mrb[2].mxu0 %vm468_vm2, %v466_v1  ;;  %1496 = vmatmul.mubr.msk.f32.vlgmr.msra.gmra.mrb[2].mxu1 %vm468_vm2, %v467_v2 }
  0x17   : > { %1508 = vmatprep.subr.mxu1 %v1540_v0  ;;  %1510 = vmatprep.mubr.msk.f32.mxu1 %vm1541_vm0, %v1540_v0 }
  0x18   : > { %1498 = vmatprep.subr.mxu0 %v1540_v0  ;;  %1500 = vmatprep.mubr.msk.f32.mxu0 %vm1541_vm0, %v1540_v0 }
  0xe5   : > { %v542_v9 = vpop.f32.mrb[0].mxu0  ;;  %v615_v10 = vpop.f32.mrb[0].mxu1 }
  0xe6   : > { %v1482_v11 = vpop.f32.mrb[1].mxu0  ;;  %v776_v12 = vrot.slane %v542_v9, %v775_v7  ;;  %v765_v13 = vrot.slane %v542_v9, %v764_v8  ;;  %v1487_v14 = vpop.f32.mrb[1].mxu1  ;;  %v787_v19 = vrot.slane %v615_v10, %v764_v8  ;;  %v798_v20 = vrot.slane %v615_v10, %v775_v7 }
  0xe8   : > { %778 = vbcast.lane.b32.xlu1 %v776_v12, 256  ;;  %767 = vbcast.lane.b32.xlu0 %v765_v13, 256 }
  0xe9   : > { %v688_v15 = vpop.f32.mrb[2].mxu0  ;;  %v758_v16 = vpop.f32.mrb[2].mxu1 }
  0xea   : > { %v1492_v17 = vpop.f32.mrb[3].mxu0  ;;  %v1497_v18 = vpop.f32.mrb[3].mxu1  ;;  %v809_v21 = vrot.slane %v688_v15, %v764_v8  ;;  %v820_v22 = vrot.slane %v688_v15, %v775_v7  ;;  %v831_v23 = vrot.slane %v758_v16, %v764_v8  ;;  %v842_v24 = vrot.slane %v758_v16, %v775_v7 }
  0xec   : > { %782 = vbcast.lane.b32.xlu1 %v776_v12, 264  ;;  %771 = vbcast.lane.b32.xlu0 %v765_v13, 264 }
  0xf0   : > { %793 = vbcast.lane.b32.xlu1 %v787_v19, 264  ;;  %789 = vbcast.lane.b32.xlu0 %v787_v19, 256 }
  0xf4   : > { %804 = vbcast.lane.b32.xlu1 %v798_v20, 264  ;;  %800 = vbcast.lane.b32.xlu0 %v798_v20, 256 }
  0xf8   : > { %815 = vbcast.lane.b32.xlu1 %v809_v21, 264  ;;  %811 = vbcast.lane.b32.xlu0 %v809_v21, 256 }
  0xfc   : > { %826 = vbcast.lane.b32.xlu1 %v820_v22, 264  ;;  %822 = vbcast.lane.b32.xlu0 %v820_v22, 256 }
 0x100   : > { %837 = vbcast.lane.b32.xlu1 %v831_v23, 264  ;;  %833 = vbcast.lane.b32.xlu0 %v831_v23, 256 }
 0x104   : > { %848 = vbcast.lane.b32.xlu1 %v842_v24, 264  ;;  %844 = vbcast.lane.b32.xlu0 %v842_v24, 256 }
 0x15a   : > { %v779_v26 = vpop.permute.xlu1 %778  ;;  %v768_v27 = vpop.permute.xlu0 %767 }
 0x15b   : > { %v1710_v42 = vmul.f32 %v1665_v25, %v779_v26  ;;  %v1713_v43 = vmul.f32 %v1670_v28, %v779_v26  ;;  %v1716_v44 = vmul.f32 %v1675_v29, %v779_v26  ;;  %v1719_v45 = vmul.f32 %v1680_v30, %v779_v26 }
 0x15c   : > { %v1730_v49 = vmul.f32 %v850_v31, %v768_v27  ;;  %v921_v50 = vmul.f32 %v854_v32, %v768_v27  ;;  %v967_v51 = vmul.f32 %v866_v33, %v768_v27  ;;  %v997_v52 = vmul.f32 %v870_v34, %v768_v27  ;;  %v859_v27 = vld [vmem:[%s1841_s8 + $0x8] sm:$0xff] }
 0x15e   : > { %v783_v39 = vpop.permute.xlu1 %782  ;;  %v772_v41 = vpop.permute.xlu0 %771 }
 0x15f   : > { %v1732_v53 = vmul.f32 %v853_v35, %v783_v39  ;;  %v1734_v54 = vmul.f32 %v857_v36, %v783_v39  ;;  %v970_v55 = vmul.f32 %v869_v37, %v783_v39  ;;  %v1000_v56 = vmul.f32 %v873_v38, %v783_v39 }
 0x160   : > { %v875_v57 = vmul.f32 %v851_v40, %v772_v41  ;;  %v922_v58 = vmul.f32 %v855_v46, %v772_v41  ;;  %v968_v59 = vmul.f32 %v867_v47, %v772_v41  ;;  %v998_v60 = vmul.f32 %v871_v48, %v772_v41 }
 0x162   : > { %v794_v61 = vpop.permute.xlu1 %793  ;;  %v790_v62 = vpop.permute.xlu0 %789 }
 0x163   : > { %v879_v63 = vmul.f32 %v855_v46, %v794_v61  ;;  %v926_v1 = vmul.f32 %v851_v40, %v794_v61  ;;  %v972_v2 = vmul.f32 %v871_v48, %v794_v61  ;;  %v1002_v3 = vmul.f32 %v867_v47, %v794_v61 }
 0x164   : > { %v1736_v4 = vmul.f32 %v854_v32, %v790_v62  ;;  %v925_v5 = vmul.f32 %v850_v31, %v790_v62  ;;  %v971_v6 = vmul.f32 %v870_v34, %v790_v62  ;;  %v1001_v7 = vmul.f32 %v866_v33, %v790_v62  ;;  %v863_v31 = vld [vmem:[%s1842_s9 + $0x8] sm:$0xff] }
 0x165   : > { %v976_v8 = vsub.f32 %v968_v59, %v972_v2  ;;  %v1006_v9 = vadd.f32 %v1002_v3, %v998_v60  ;;  %v883_v10 = vsub.f32 %v875_v57, %v879_v63  ;;  %v930_v11 = vadd.f32 %v926_v1, %v922_v58  ;;  %v865_v59 = vld [vmem:[%s1842_s9 + $0x18] sm:$0xff] }
 0x166   : > { %v975_v12 = vsub.f32 %v967_v51, %v971_v6  ;;  %v1005_v13 = vadd.f32 %v1001_v7, %v997_v52  ;;  %v805_v14 = vpop.permute.xlu1 %804  ;;  %v801_v15 = vpop.permute.xlu0 %800  ;;  %v882_v16 = vsub.f32 %v1730_v49, %v1736_v4  ;;  %v929_v17 = vadd.f32 %v925_v5, %v921_v50  ;;  %v858_v50 = vld [vmem:[%s1841_s8] sm:$0xff]  ;;  %v861_v52 = vld [vmem:[%s1841_s8 + $0x18] sm:$0xff]  ;;  %v860_v5 = vld [vmem:[%s1841_s8 + $0x10] sm:$0xff] }
 0x167   : > { %v980_v18 = vsel %vm902_vm3, %v976_v8, 0.0  ;;  %v1010_v19 = vsel %vm902_vm3, %v1006_v9, 0.0  ;;  %v881_v20 = vmul.f32 %v857_v36, %v805_v14  ;;  %v928_v21 = vmul.f32 %v853_v35, %v805_v14  ;;  %v864_v6 = vld [vmem:[%s1842_s9 + $0x10] sm:$0xff] }
 0x168   : > { %v979_v22 = vsel %vm902_vm3, %v975_v12, 0.0  ;;  %v1009_v23 = vsel %vm902_vm3, %v1005_v13, 0.0  ;;  %v974_v24 = vmul.f32 %v873_v38, %v805_v14  ;;  %v1004_v26 = vmul.f32 %v869_v37, %v805_v14 }
 0x169   : > { %v981_v32 = vadd.f32 %v980_v18, %v979_v22  ;;  %v1011_v33 = vadd.f32 %v1010_v19, %v1009_v23  ;;  %v880_v34 = vmul.f32 %v1670_v28, %v801_v15  ;;  %v927_v35 = vmul.f32 %v1665_v25, %v801_v15  ;;  %v862_v25 = vld [vmem:[%s1842_s9] sm:$0xff] }
 0x16a   : > { %v978_v36 = vsub.f32 %v970_v55, %v974_v24  ;;  %v1008_v39 = vadd.f32 %v1004_v26, %v1000_v56  ;;  %v973_v40 = vmul.f32 %v1680_v30, %v801_v15  ;;  %v1003_v37 = vmul.f32 %v1675_v29, %v801_v15  ;;  %v816_v38 = vpop.permute.xlu1 %815  ;;  %v812_v41 = vpop.permute.xlu0 %811 }
 0x16b   : > { %v982_v46 = vrot.slane %v981_v32, 4  ;;  %v1012_v47 = vrot.slane %v1011_v33, 4  ;;  %v887_v48 = vmul.f32 %v859_v27, %v816_v38  ;;  %v934_v49 = vmul.f32 %v863_v31, %v816_v38 }
 0x16c   : > { %v989_v28 = vsel %vm902_vm3, %v978_v36, 0.0  ;;  %v1019_v30 = vsel %vm902_vm3, %v1008_v39, 0.0  ;;  %v977_v29 = vsub.f32 %v1716_v44, %v973_v40  ;;  %v1007_v51 = vadd.f32 %v1003_v37, %v1719_v45 }
 0x16d   : > { %v1767_v55 = vadd.f32 %v982_v46, %v981_v32  ;;  %v1769_v56 = vadd.f32 %v1012_v47, %v1011_v33  ;;  %v891_v57 = vadd.f32 %v887_v48, %v883_v10  ;;  %v938_v58 = vadd.f32 %v934_v49, %v930_v11 }
 0x16e   : > { %v988_v60 = vsel %vm902_vm3, %v977_v29, 0.0  ;;  %v1018_v44 = vsel %vm902_vm3, %v1007_v51, 0.0  ;;  %v886_v61 = vmul.f32 %v858_v50, %v812_v41  ;;  %v933_v45 = vmul.f32 %v862_v25, %v812_v41  ;;  %v827_v62 = vpop.permute.xlu1 %826  ;;  %v823_v63 = vpop.permute.xlu0 %822 }
 0x16f   : > { %v990_v1 = vadd.f32 %v989_v28, %v988_v60  ;;  %v1020_v2 = vadd.f32 %v1019_v30, %v1018_v44  ;;  %v885_v3 = vsub.f32 %v1732_v53, %v881_v20  ;;  %v889_v4 = vmul.f32 %v861_v52, %v827_v62 }
 0x170   : > { %v890_v7 = vadd.f32 %v886_v61, %v882_v16  ;;  %v937_v8 = vadd.f32 %v933_v45, %v929_v17  ;;  %v932_v9 = vadd.f32 %v928_v21, %v1734_v54  ;;  %v936_v10 = vmul.f32 %v865_v59, %v827_v62 }
 0x171   : > { %v991_v11 = vrot.slane %v990_v1, 4  ;;  %v1021_v12 = vrot.slane %v1020_v2, 4  ;;  %v893_v13 = vadd.f32 %v889_v4, %v885_v3  ;;  %v884_v14 = vsub.f32 %v1710_v42, %v880_v34 }
 0x172   : > { %v838_v53 = vpop.permute.xlu1 %837  ;;  %v834_v15 = vpop.permute.xlu0 %833  ;;  %v940_v18 = vadd.f32 %v936_v10, %v932_v9  ;;  %v888_v19 = vmul.f32 %v860_v5, %v823_v63  ;;  %v931_v20 = vadd.f32 %v927_v35, %v1713_v43  ;;  %v935_v22 = vmul.f32 %v864_v6, %v823_v63 }
 0x173   : > { %v992_v23 = vadd.f32 %v991_v11, %v990_v1  ;;  %v1022_v24 = vadd.f32 %v1021_v12, %v1020_v2  ;;  %v895_v26 = vmul.f32 %v863_v31, %v838_v53  ;;  %v942_v16 = vmul.f32 %v859_v27, %v838_v53 }
 0x174   : > { %v894_v17 = vmul.f32 %v862_v25, %v834_v15  ;;  %v941_v32 = vmul.f32 %v858_v50, %v834_v15  ;;  %v892_v54 = vadd.f32 %v888_v19, %v884_v14  ;;  %v939_v21 = vadd.f32 %v935_v22, %v931_v20 }
 0x175   : > { %v899_v33 = vsub.f32 %v891_v57, %v895_v26  ;;  %v946_v36 = vadd.f32 %v942_v16, %v938_v58  ;;  %v1014_v39 = vrot.slane %v1769_v56, 2  ;;  %v1023_v42 = vrot.slane %v1022_v24, 2 }
 0x176   : > { %v898_v34 = vsub.f32 %v890_v7, %v894_v17  ;;  %v945_v40 = vadd.f32 %v941_v32, %v937_v8  ;;  %v849_v37 = vpop.permute.xlu1 %848  ;;  %v845_v38 = vpop.permute.xlu0 %844  ;;  %v984_v43 = vrot.slane %v1767_v55, 2  ;;  %v993_v35 = vrot.slane %v992_v23, 2 }
 0x177   : > { %v904_v31 = vsel %vm902_vm3, %v899_v33, 0.0  ;;  %v950_v27 = vsel %vm902_vm3, %v946_v36, 0.0  ;;  %v897_v41 = vmul.f32 %v865_v59, %v849_v37  ;;  %v944_v46 = vmul.f32 %v861_v52, %v849_v37 }
 0x178   : > { %v903_v47 = vsel %vm902_vm3, %v898_v34, 0.0  ;;  %v949_v48 = vsel %vm902_vm3, %v945_v40, 0.0  ;;  %v896_v49 = vmul.f32 %v864_v6, %v845_v38  ;;  %v943_v50 = vmul.f32 %v860_v5, %v845_v38 }
 0x179   : > { %v905_v25 = vadd.f32 %v904_v31, %v903_v47  ;;  %v951_v28 = vadd.f32 %v950_v27, %v949_v48  ;;  %v901_v30 = vsub.f32 %v893_v13, %v897_v41  ;;  %v948_v29 = vadd.f32 %v944_v46, %v940_v18  ;;  %v1028_v13 = vld [vmem:[%s1838_s5] sm:$0x3] }
 0x17a   : > { %v900_v51 = vsub.f32 %v892_v54, %v896_v49  ;;  %v947_v57 = vadd.f32 %v943_v50, %v939_v21  ;;  %v1015_v58 = vadd.f32 %v1014_v39, %v1769_v56  ;;  %v1024_v60 = vadd.f32 %v1023_v42, %v1022_v24  ;;  %v1027_v39 = vld [vmem:[%s1837_s4] sm:$0x3] }
 0x17b   : > { %v906_v44 = vrot.slane %v905_v25, 4  ;;  %v952_v61 = vrot.slane %v951_v28, 4  ;;  %v913_v59 = vsel %vm902_vm3, %v901_v30, 0.0  ;;  %v959_v52 = vsel %vm902_vm3, %v948_v29, 0.0 }
 0x17c   : > { %v912_v45 = vsel %vm902_vm3, %v900_v51, 0.0  ;;  %v958_v62 = vsel %vm902_vm3, %v947_v57, 0.0  ;;  %v1016_v63 = vrot.slane %v1015_v58, 1  ;;  %v1025_v1 = vrot.slane %v1024_v60, 1 }
 0x17d   : > { %v907_v2 = vadd.f32 %v906_v44, %v905_v25  ;;  %v953_v3 = vadd.f32 %v952_v61, %v951_v28  ;;  %v914_v4 = vadd.f32 %v913_v59, %v912_v45  ;;  %v960_v5 = vadd.f32 %v959_v52, %v958_v62 }
 0x17e   : > { %v1017_v6 = vadd.f32 %v1016_v63, %v1015_v58  ;;  %v1026_v7 = vadd.f32 %v1025_v1, %v1024_v60  ;;  %v985_v56 = vadd.f32 %v984_v43, %v1767_v55  ;;  %v994_v8 = vadd.f32 %v993_v35, %v992_v23 }
 0x17f   : > { %v908_v9 = vrot.slane %v907_v2, 2  ;;  %v954_v10 = vrot.slane %v953_v3, 2  ;;  %v915_v11 = vrot.slane %v914_v4, 4  ;;  %v961_v12 = vrot.slane %v960_v5, 4 }
 0x180   : > { %v1190_v14 = vsel %vm1031_vm4, %v1026_v7, %v1017_v6  ;;  %v986_v53 = vrot.slane %v985_v56, 1  ;;  %v995_v15 = vrot.slane %v994_v8, 1 }
 0x181   : > { %v955_v18 = vadd.f32 %v954_v10, %v953_v3  ;;  %v916_v19 = vadd.f32 %v915_v11, %v914_v4  ;;  %v962_v20 = vadd.f32 %v961_v12, %v960_v5  ;;  %1509 = vmatpush3.msk.msra.mxu1 %vm472_vm1, %v1190_v14  ;;  %v909_v23 = vadd.f32 %v908_v9, %v907_v2 }
 0x182   : > { %1513 = vmatprep.subr.mxu1 %v1540_v0  ;;  %1511 = vmatmul.mubr.msk.f32.vlgmr.msra.gmra.mrb[4].mxu1 %vm468_vm2, %v1028_v13  ;;  %v987_v55 = vadd.f32 %v986_v53, %v985_v56  ;;  %v996_v22 = vadd.f32 %v995_v15, %v994_v8 }
 0x183   : > { %v917_v24 = vrot.slane %v916_v19, 2  ;;  %v963_v26 = vrot.slane %v962_v20, 2  ;;  %1515 = vmatprep.mubr.msk.f32.mxu1 %vm1541_vm0, %v1540_v0  ;;  %v956_v54 = vrot.slane %v955_v18, 1  ;;  %v910_v36 = vrot.slane %v909_v23, 1 }
 0x184   : > { %v1265_v16 = vsel %vm1031_vm4, %v996_v22, %v987_v55 }
 0x185   : > { %v918_v17 = vadd.f32 %v917_v24, %v916_v19  ;;  %v964_v32 = vadd.f32 %v963_v26, %v962_v20  ;;  %1514 = vmatpush3.msk.msra.mxu1 %vm472_vm1, %v1265_v16  ;;  %v957_v42 = vadd.f32 %v956_v54, %v955_v18  ;;  %v911_v38 = vadd.f32 %v910_v36, %v909_v23 }
 0x187   : > { %v919_v21 = vrot.slane %v918_v17, 1  ;;  %v965_v33 = vrot.slane %v964_v32, 1 }
 0x189   : > { %v966_v34 = vadd.f32 %v965_v33, %v964_v32  ;;  %v920_v40 = vadd.f32 %v919_v21, %v918_v17 }
 0x18a   : > { %1516 = vmatmul.mubr.msk.f32.vlgmr.msra.gmra.mrb[4].mxu1 %vm468_vm2, %v1027_v39 }
 0x18b   : > { %v1032_v37 = vsel %vm1031_vm4, %v966_v34, %v957_v42  ;;  %v1110_v43 = vsel %vm1031_vm4, %v920_v40, %v911_v38 }
 0x18c   : > { %1499 = vmatpush3.msk.msra.mxu0 %vm472_vm1, %v1032_v37 }
 0x18d   : > { %1501 = vmatmul.mubr.msk.f32.vlgmr.msra.gmra.mrb[4].mxu0 %vm468_vm2, %v1028_v13  ;;  %1503 = vmatprep.subr.mxu0 %v1540_v0 }
 0x18e   : > { %1504 = vmatpush3.msk.msra.mxu0 %vm472_vm1, %v1110_v43  ;;  %1505 = vmatprep.mubr.msk.f32.mxu0 %vm1541_vm0, %v1540_v0 }
 0x195   : > { %1506 = vmatmul.mubr.msk.f32.vlgmr.msra.gmra.mrb[4].mxu0 %vm468_vm2, %v1027_v39 }
 0x25d   : > { %v1334_v35 = vpop.f32.mrb[4].mxu1 }
 0x25e   : > { %1338 = vst.msk [vmem:[%s463_s15] sm:$0x3] %vm1186_vm5, %v1334_v35  ;;  %v1517_v31 = vpop.f32.mrb[5].mxu1 }
 0x268   : > { %v1182_v27 = vpop.f32.mrb[4].mxu0 }
 0x269   : > { %1187 = vst.msk [vmem:[%s459_s18] sm:$0x3] %vm1186_vm5, %v1182_v27  ;;  %v1507_v41 = vpop.f32.mrb[5].mxu0 }
 0x26a PF: > { %s24_s25 = sadd.s32 1, %s1538_s25  }
 0x26b   : > { %p21_p4 = scmp.ge.s32.totalorder %s24_s25, 4  }
 0x26d   :  { %23 = sbr.rel (!%p21_p4) target bundleno = 1 (0x1), region = 113 }

// kernel: multiwavelet_cross_forward.50
= control target key start
LH: loop header
LB: loop body
LE: loop exit
PB: predicated region body
PF: predicated region fallthrough
CT: control target
= control target key end

     0   :  { %v122_v0 = vmov 0.0|0.0   ;;  %vm123_vm0 = vmmov 0   ;;  %v124_v3 = vmov 0.0   ;;  %vm24_vm1 = vcmask 130048   ;;  %s160_s1 = inlined_call_operand.vmem [shape: f32[16,16], index: 1, kind: input, shape index: {}]   ;;  %s161_s0 = inlined_call_operand.vmem [shape: f32[4,16], index: 0, kind: input, shape index: {}]   ;;  %s162_s2 = inlined_call_operand.vmem [shape: f32[1,16], index: 2, kind: input, shape index: {}]   ;;  %s163_s3 = inlined_call_operand.vmem [shape: f32[4,16], index: 3, kind: output, shape index: {}]  }
   0x1   :  { %116 = vmatprep.subr.bf16.mxu0 %v122_v0  ;;  %v15_v1 = vld [vmem:[%s160_s1] sm:$0xff]  ;;  %v16_v2 = vld [vmem:[%s160_s1 + $0x8] sm:$0xff]  ;;  %113 = vmatprep.mubr.msk.f32.mxu0 %vm123_vm0, %v124_v3  ;;  %vm98_vm2 = vcmask 125952  }
   0x2   :  { %v117_v4 = vpack.c.bf16 %v16_v2, %v15_v1  ;;  %v14_v5 = vld [vmem:[%s161_s0] sm:$0xf] }
   0x3   :  { %v104_v6 = vld [vmem:[%s162_s2] ss:$0 sm:$0xff] }
   0x4   :  { %118 = vmatpush3.bf16.msra.mxu0 %v117_v4 }
   0x7   :  { %114 = vmatmul.mubr.msk.f32.vlgmr.msra.gmra.mrb[0].mxu0 %vm24_vm1, %v14_v5 }
  0xda   :  { %v94_v7 = vpop.f32.mrb[0].mxu0 }
  0xdb   :  { %v95_v8 = vadd.f32 %v104_v6, %v94_v7  ;;  %v115_v9 = vpop.f32.mrb[1].mxu0 }
  0xdd   :  { %99 = vst.msk [vmem:[%s163_s3] sm:$0xf] %vm98_vm2, %v95_v8 }

// kernel: multiwavelet_cross_forward.61
= control target key start
LH: loop header
LB: loop body
LE: loop exit
PB: predicated region body
PF: predicated region fallthrough
CT: control target
= control target key end

     0   :  { %vm26_vm0 = vcmask 130048   ;;  %s225_s0 = inlined_call_operand.vmem [shape: f32[16,16], index: 0, kind: input, shape index: {}]   ;;  %s226_s1 = inlined_call_operand.vmem [shape: f32[16,16], index: 1, kind: input, shape index: {}]   ;;  %s227_s2 = inlined_call_operand.vmem [shape: f32[1,16], index: 2, kind: input, shape index: {}]   ;;  %s228_s3 = inlined_call_operand.hbm [shape: f32[16,16], index: 3, kind: output, shape index: {}]  }
   0x1   :  { %v17_v0 = vld [vmem:[%s226_s1] sm:$0xff]  ;;  %v18_v1 = vld [vmem:[%s226_s1 + $0x8] sm:$0xff] }
   0x2   :  { %v15_v2 = vld [vmem:[%s225_s0] sm:$0xff]  ;;  %v140_v3 = vpack.c.bf16 %v18_v1, %v17_v0 }
   0x3   :  { %137 = vmatprep.mubr.msk.f32.mxu0 %vm26_vm0, %v15_v2 }
   0x4   :  { %8 = vsyncpa [#allocation3], 0  ;;  %141 = vmatprep.subr.bf16.mxu0 %v140_v3  ;;  %v16_v4 = vld [vmem:[%s225_s0 + $0x8] sm:$0xff]  ;;  %v126_v5 = vld [vmem:[%s227_s2] ss:$0 sm:$0xff]  ;;  %s171_s1 = smov [#allocation2]  }
   0x5   :  { %143 = vmatpush3.bf16.msra.mxu0 %v140_v3  ;;  %s115_s22 = sshll.u32 %s171_s1, 4  ;;  %s116_s22 = int_to_ptr.vmem [resolvable:$true] %s115_s22 }
   0x6   :  { %s147_s23 = scalar_lea.vmem %s116_s22, 256  ;;  %p152_p1 = scmp.lt.s32.totalorder %s116_s22, %s116_s22 }
   0x7   :  { %p148_p0 = scmp.ne.s32.totalorder %s116_s22, %s147_s23  ;;  %p153_p2 = scmp.lt.s32.totalorder %s147_s23, %s147_s23 }
   0x8   :  { %138 = vmatmul.mubr.msk.f32.vlgmr.msra.gmra.mrb[0].mxu0 %vm26_vm0, %v16_v4 }
   0x9   :  { %p154_p3 = por %p153_p2, %p152_p1 }
   0xb   :  { %p155_p4 = pnand %p154_p3, %p148_p0 }
  0xdb   :  { %v139_v6 = vpop.f32.mrb[0].mxu0 }
  0xdc   :  { %v105_v7 = vadd.f32 %v139_v6, %v126_v5  ;;  %v99_v8 = vpop.f32.mrb[1].mxu0 }
  0xdd   :  { %v100_v9 = vadd.f32 %v126_v5, %v99_v8 }
  0xde   :  { %109 = vst.msk [vmem:[#allocation2 + $0x8] sm:$0xff] %vm26_vm0, %v105_v7 }
  0xdf   :  { %108 = vst.msk [vmem:[#allocation2] sm:$0xff] %vm26_vm0, %v100_v9 }
  0xe0   :  { %158 = shalt.err (!%p155_p4)
}
  0xe1   :  { %s159_s24 = scalar_lea.hbm %s228_s3, 256 }
  0xe2   :  { %p160_p5 = scmp.ne.s32.totalorder %s228_s3, %s159_s24  ;;  %p163_p6 = scmp.lt.u32.totalorder %s159_s24, %s228_s3 }
  0xe4   :  { %p165_p7 = pnand %p163_p6, %p160_p5 }
  0xe6   :  { %168 = shalt.err (!%p165_p7)
}
  0xe7   :  { %s172_s29 = smov 128   ;;  %s173_s30 = smov 8  }
  0xe8   :  { %121 = dma.vmem_to_hbm [thread:$0]  %s116_s22, 256, %s228_s3, [#allocation3], %s172_s29, %s172_s29, %s173_s30  }
  0xe9   :  { %169 = dma.done.wait [#allocation3], 256  }
  0xea   :  { %170 = vsyncadd [#allocation3], 4294967040 }
  0xeb   :  { %125 = vsyncpa [#allocation3], 1 }

</bundles_post_ra>
